<compile_context>
chip_gen: v6e
topology: v6e:2x2x1
jax: 0.10.0
libtpu: 0.0.40
codegen_flags: <defaults>
</compile_context>

<pallas_src>
import math

import numpy as np
import jax
import jax.numpy as jnp
from jax.experimental import pallas as pl
from jax.experimental.pallas import tpu as pltpu


# ---------------------------------------------------------------------------
# Deterministic "parameter" setup: the sinc interpolation filter bank.
# (torchaudio _get_sinc_resample_kernel, resampling_method="sinc_interp_hann")
# ---------------------------------------------------------------------------
def _make_sinc_kernel(orig_freq, new_freq, lowpass_filter_width=6, rolloff=0.99):
    base_freq = min(orig_freq, new_freq) * rolloff
    width = int(math.ceil(lowpass_filter_width * orig_freq / base_freq))
    idx = np.arange(-width, width + orig_freq, dtype=np.float64)[None, :] / orig_freq
    t = (-np.arange(new_freq, dtype=np.float64)[:, None] / new_freq + idx) * base_freq
    t = np.clip(t, -lowpass_filter_width, lowpass_filter_width)
    window = np.cos(t * math.pi / lowpass_filter_width / 2.0) ** 2  # Hann window
    t = t * math.pi
    scale = base_freq / orig_freq
    t_safe = np.where(t == 0, 1.0, t)
    kernels = np.where(t == 0, 1.0, np.sin(t) / t_safe)
    kernels = kernels * window * scale
    # shape (new_freq, K) with K = 2*width + orig_freq
    return kernels.astype(np.float32), width


# ---------------------------------------------------------------------------
# Pallas kernel: one block-Toeplitz matmul pair per (row-tile, frame-block).
# ---------------------------------------------------------------------------
def _resample_kernel(xa_ref, xb_ref, wt_ref, wb_ref, o_ref):
    # out(Nt, Fb*P) = x_cur @ W_top + x_overlap @ W_bot
    o_ref[...] = (
        jnp.dot(xa_ref[...], wt_ref[...], preferred_element_type=jnp.float32)
        + jnp.dot(xb_ref[...], wb_ref[...], preferred_element_type=jnp.float32)
    )


def sinc_resample(x, lr_sr, hr_sr, hr_len=None):
    """Pallas TPU implementation of Sinc.forward(x, hr_len). hr_len is ignored,
    matching the reference module."""
    del hr_len
    g = math.gcd(int(lr_sr), int(hr_sr))
    s, P = int(lr_sr) // g, int(hr_sr) // g      # orig_freq (stride), new_freq
    shape = x.shape
    T = int(shape[-1])
    if s == P:
        return x

    w, width = _make_sinc_kernel(s, P)           # (P, K)
    K = int(w.shape[1])                          # K = 2*width + s

    N = 1
    for d in shape[:-1]:
        N *= int(d)

    target_length = int(math.ceil(P * T / s))
    F = T // s + 1                               # frames produced by the strided conv

    # ---- tiling choices --------------------------------------------------
    # Overlap slab width: only the first K - s samples of the next chunk ever
    # contribute to frames of the current block; round up to a lane multiple.
    C_ov = max(128, -(-(K - s) // 128) * 128)
    # Chunk width C = Fb*s must be a multiple of C_ov (itself a 128 multiple)
    # so the overlap slab's offset (b+1)*C is block-aligned.
    # TODO(synk): for exotic coprime rate ratios (e.g. 147<->160) the minimal
    # aligned chunk becomes very large; such pairs need an Element-offset path.
    r = C_ov // math.gcd(s, C_ov)
    c_min = max(512, K)                          # keep the MXU contraction deep
    Fb = r * max(1, -(-c_min // (r * s)))        # ceil
    C = Fb * s                                   # chunk width (multiple of C_ov)
    assert C % C_ov == 0 and C % 128 == 0
    ov = C // C_ov                               # overlap blocks per chunk
    FbP = Fb * P                                 # logical output width per block
    FbP_pad = -(-FbP // 128) * 128               # lane-dense output tile

    Bf = -(-F // Fb)                             # number of frame blocks
    n_tile = min(256, -(-N // 8) * 8)            # row tile (multiple of 8 sublanes)
    N_pad = -(-N // n_tile) * n_tile

    # ---- block-Toeplitz filter bank: W[j*s + k, j*P + p] = w[p, k] --------
    Wb = np.zeros((C + C_ov, FbP_pad), np.float32)
    wT = np.ascontiguousarray(w.T)               # (K, P)
    for j in range(Fb):
        Wb[j * s: j * s + K, j * P: (j + 1) * P] = wT
    w_top = jnp.asarray(Wb[:C])                  # (C, FbP_pad)      resident
    w_bot = jnp.asarray(Wb[C:])                  # (C_ov, FbP_pad)   resident

    # ---- padded input (single pad pass, zeros == torchaudio's padding) ----
    Lpad = (Bf + 1) * C                          # room for the trailing overlap slab
    xf = x.reshape(N, T).astype(jnp.float32)
    xpad = jnp.pad(xf, ((0, N_pad - N), (width, Lpad - width - T)))

    grid = (N_pad // n_tile, Bf)

    # VMEM budget: double-buffered input chunk + overlap slab + output tile,
    # plus the two resident filter-bank halves (counted twice to be safe).
    vmem_bytes = 4 * (
        2 * n_tile * C + 2 * n_tile * C_ov
        + 2 * C * FbP_pad + 2 * C_ov * FbP_pad
        + 2 * n_tile * FbP_pad
    )
    vmem_limit = int(min(64 * 2**20, max(32 * 2**20, 2 * vmem_bytes)))

    out = pl.pallas_call(
        _resample_kernel,
        grid=grid,
        in_specs=[
            pl.BlockSpec((n_tile, C), lambda i, b: (i, b)),                  # current chunk
            pl.BlockSpec((n_tile, C_ov), lambda i, b: (i, (b + 1) * ov)),    # overlap slab
            pl.BlockSpec((C, FbP_pad), lambda i, b: (0, 0)),                 # W_top (resident)
            pl.BlockSpec((C_ov, FbP_pad), lambda i, b: (0, 0)),              # W_bot (resident)
        ],
        out_specs=pl.BlockSpec((n_tile, FbP_pad), lambda i, b: (i, b)),
        out_shape=jax.ShapeDtypeStruct((N_pad, Bf * FbP_pad), jnp.float32),
        compiler_params=pltpu.CompilerParams(
            dimension_semantics=("parallel", "parallel"),
            vmem_limit_bytes=vmem_limit,
        ),
    )(xpad, xpad, w_top, w_bot)

    # Output is already (rows, frame-major * phase): no transpose pass needed.
    if FbP_pad != FbP:
        out = out.reshape(N_pad, Bf, FbP_pad)[:, :, :FbP].reshape(N_pad, Bf * FbP)
    res = out[:N, :target_length]
    return res.reshape(shape[:-1] + (target_length,))


# ---------------------------------------------------------------------------
# Pure-JAX reference (same math, no Pallas) for correctness check.
# ---------------------------------------------------------------------------
def _reference(x, lr_sr, hr_sr):
    g = math.gcd(int(lr_sr), int(hr_sr))
    s, P = int(lr_sr) // g, int(hr_sr) // g
    if s == P:
        return x
    w, width = _make_sinc_kernel(s, P)
    K = int(w.shape[1])
    shape = x.shape
    T = int(shape[-1])
    N = 1
    for d in shape[:-1]:
        N *= int(d)
    xf = x.reshape(N, T).astype(jnp.float32)
    xpad = jnp.pad(xf, ((0, 0), (width, width + s)))
    F = T // s + 1
    frames = jnp.stack(
        [xpad[:, f * s: f * s + K] for f in range(F)], axis=1
    )  # (N, F, K)
    out = jnp.einsum("nfk,pk->nfp", frames, jnp.asarray(w))  # (N, F, P)
    target_length = int(math.ceil(P * T / s))
    res = out.reshape(N, F * P)[:, :target_length]
    return res.reshape(shape[:-1] + (target_length,))


if __name__ == "__main__":
    key = jax.random.PRNGKey(0)
    B, Cch, T = 2, 4, 64
    lr_sr, hr_sr = 8000, 12000            # -> orig_freq=2, new_freq=3 after gcd

    x = jax.random.normal(key, (B, Cch, T), dtype=jnp.float32)
    hr_len = int(math.ceil(hr_sr * T / lr_sr))   # mirrors forward(x, hr_len); unused

    y = sinc_resample(x, lr_sr, hr_sr, hr_len)
    y = jax.block_until_ready(y)

    ref = _reference(x, lr_sr, hr_sr)
    assert y.shape == (B, Cch, hr_len), y.shape
    max_err = float(jnp.max(jnp.abs(y - ref)))
    assert jnp.allclose(y, ref, atol=1e-3, rtol=1e-3), max_err

    print("KERNEL_OK")
</pallas_src>

<mosaic_0001>
module attributes {stable_mosaic.version = 11 : i64} {
  func.func @_resample_kernel(%arg0: i32, %arg1: i32, %arg2: memref<8x512xf32, #tpu.memory_space<vmem>>, %arg3: memref<8x128xf32, #tpu.memory_space<vmem>>, %arg4: memref<512x768xf32, #tpu.memory_space<vmem>>, %arg5: memref<128x768xf32, #tpu.memory_space<vmem>>, %arg6: memref<8x768xf32, #tpu.memory_space<vmem>>) attributes {dimension_semantics = [#tpu.dimension_semantics<parallel>, #tpu.dimension_semantics<parallel>], iteration_bounds = array<i64: 1, 1>, scalar_prefetch = 0 : i64, scratch_operands = 0 : i64, tpu.core_type = #tpu.core_type<tc>, window_params = [{transform_indices = @transform_0, window_bounds = array<i64: 8, 512>}, {transform_indices = @transform_1, window_bounds = array<i64: 8, 128>}, {pipeline_mode = #tpu.pipeline_mode<synchronous>, transform_indices = @transform_2, window_bounds = array<i64: 512, 768>}, {pipeline_mode = #tpu.pipeline_mode<synchronous>, transform_indices = @transform_3, window_bounds = array<i64: 128, 768>}, {transform_indices = @transform_4, window_bounds = array<i64: 8, 768>}]} {
    %c0 = arith.constant 0 : index
    %c0_0 = arith.constant 0 : index
    %0 = vector.load %arg2[%c0, %c0_0] : memref<8x512xf32, #tpu.memory_space<vmem>>, vector<8x512xf32>
    %c0_1 = arith.constant 0 : index
    %c0_2 = arith.constant 0 : index
    %1 = vector.load %arg4[%c0_1, %c0_2] : memref<512x768xf32, #tpu.memory_space<vmem>>, vector<512x768xf32>
    %cst = arith.constant dense<0.000000e+00> : vector<8x768xf32>
    %2 = tpu.matmul %0, %1, %cst {dimension_numbers = #tpu.dot_dimension_numbers<[1], [0], [0], [1], [0, 0, 1, 1], [], []>} : vector<8x512xf32>, vector<512x768xf32>, vector<8x768xf32> -> vector<8x768xf32>
    %c0_3 = arith.constant 0 : index
    %c0_4 = arith.constant 0 : index
    %3 = vector.load %arg3[%c0_3, %c0_4] : memref<8x128xf32, #tpu.memory_space<vmem>>, vector<8x128xf32>
    %c0_5 = arith.constant 0 : index
    %c0_6 = arith.constant 0 : index
    %4 = vector.load %arg5[%c0_5, %c0_6] : memref<128x768xf32, #tpu.memory_space<vmem>>, vector<128x768xf32>
    %cst_7 = arith.constant dense<0.000000e+00> : vector<8x768xf32>
    %5 = tpu.matmul %3, %4, %cst_7 {dimension_numbers = #tpu.dot_dimension_numbers<[1], [0], [0], [1], [0, 0, 1, 1], [], []>} : vector<8x128xf32>, vector<128x768xf32>, vector<8x768xf32> -> vector<8x768xf32>
    %6 = arith.addf %2, %5 : vector<8x768xf32>
    %c0_8 = arith.constant 0 : index
    %c0_9 = arith.constant 0 : index
    %7 = vector.load %arg6[%c0_8, %c0_9] : memref<8x768xf32, #tpu.memory_space<vmem>>, vector<8x768xf32>
    tpu.vector_store %arg6[%c0_8, %c0_9], %6 {strides = array<i32>} : memref<8x768xf32, #tpu.memory_space<vmem>>, vector<8x768xf32>,
    return
  }
  func.func @transform_0(%arg0: i32, %arg1: i32) -> (i32, i32) {
    %c0_i32 = arith.constant 0 : i32
    return %arg0, %arg1 : i32, i32
  }
  func.func @transform_1(%arg0: i32, %arg1: i32) -> (i32, i32) {
    %c1_i32 = arith.constant 1 : i32
    %0 = arith.addi %arg1, %c1_i32 : i32
    %c4_i32 = arith.constant 4 : i32
    %1 = arith.muli %0, %c4_i32 : i32
    %c0_i32 = arith.constant 0 : i32
    return %arg0, %1 : i32, i32
  }
  func.func @transform_2(%arg0: i32, %arg1: i32) -> (i32, i32) {
    %c0_i32 = arith.constant 0 : i32
    %c0_i32_0 = arith.constant 0 : i32
    %c0_i32_1 = arith.constant 0 : i32
    return %c0_i32, %c0_i32_0 : i32, i32
  }
  func.func @transform_3(%arg0: i32, %arg1: i32) -> (i32, i32) {
    %c0_i32 = arith.constant 0 : i32
    %c0_i32_0 = arith.constant 0 : i32
    %c0_i32_1 = arith.constant 0 : i32
    return %c0_i32, %c0_i32_0 : i32, i32
  }
  func.func @transform_4(%arg0: i32, %arg1: i32) -> (i32, i32) {
    %c0_i32 = arith.constant 0 : i32
    return %arg0, %arg1 : i32, i32
  }
}

</mosaic_0001>

<bundles_post_ra>
// kernel: tpu_custom_call.1
= control target key start
LH: loop header
LB: loop body
LE: loop exit
PB: predicated region body
PF: predicated region fallthrough
CT: control target
= control target key end

     0   :  { %9 = vsyncpa [#allocation3], 0  ;;  %s1418_s0 = inlined_call_operand.hbm [shape: f32[8,1024], index: 0, kind: input, shape index: {}]   ;;  %s1419_s1 = inlined_call_operand.hbm [shape: f32[8,1024], index: 1, kind: input, shape index: {}]   ;;  %s1420_s2 = inlined_call_operand.hbm [shape: f32[512,768], index: 2, kind: input, shape index: {}]   ;;  %s1421_s3 = inlined_call_operand.hbm [shape: f32[128,768], index: 3, kind: input, shape index: {}]   ;;  %s1422_s4 = inlined_call_operand.hbm [shape: f32[8,768], index: 4, kind: output, shape index: {}]  }
   0x1   :  { %10 = vsyncpa [#allocation6], 0 }
   0x2   :  { %11 = vsyncpa [#allocation9], 0  ;;  %s1222_s17 = scalar_lea.hbm %s1419_s1, 512 }
   0x3   :  { %12 = vsyncpa [#allocation4], 0  ;;  %s1344_s18 = smov [#allocation5]   ;;  %s1345_s20 = smov [#allocation2]  }
   0x4   :  { %s33_s19 = sshll.u32 %s1344_s18, 4  ;;  %s19_s21 = sshll.u32 %s1345_s20, 4  ;;  %s34_s19 = int_to_ptr.vmem [resolvable:$true] %s33_s19  ;;  %s20_s21 = int_to_ptr.vmem [resolvable:$true] %s19_s21 }
   0x5   :  { %s1243_s22 = scalar_lea.vmem %s34_s19, 128  ;;  %p1248_p1 = scmp.lt.s32.totalorder %s34_s19, %s34_s19 }
   0x6   :  { %p1244_p0 = scmp.ne.s32.totalorder %s34_s19, %s1243_s22  ;;  %p1249_p2 = scmp.lt.s32.totalorder %s1243_s22, %s1243_s22 }
   0x8   :  { %p1250_p3 = por %p1249_p2, %p1248_p1 }
   0xa   :  { %p1251_p4 = pnand %p1250_p3, %p1244_p0 }
   0xc   :  { %1254 = shalt.err (!%p1251_p4)
}
   0xd   :  { %36 = dma.hbm_to_vmem [thread:$0]  %s1222_s17, 128, %s34_s19, [#allocation6]  }
   0xe   :  { %s1264_s23 = scalar_lea.vmem %s20_s21, 512  ;;  %p1269_p6 = scmp.lt.s32.totalorder %s20_s21, %s20_s21 }
   0xf   :  { %p1265_p5 = scmp.ne.s32.totalorder %s20_s21, %s1264_s23  ;;  %p1270_p7 = scmp.lt.s32.totalorder %s1264_s23, %s1264_s23 }
  0x11   :  { %p1271_p8 = por %p1270_p7, %p1269_p6 }
  0x13   :  { %p1272_p9 = pnand %p1271_p8, %p1265_p5 }
  0x15   :  { %1275 = shalt.err (!%p1272_p9)
}
  0x16   :  { %22 = dma.hbm_to_vmem [thread:$0]  %s1418_s0, 512, %s20_s21, [#allocation3]  }
  0x17   :  { %s1346_s25 = smov [#allocation7]  }
  0x18   :  { %s42_s26 = sshll.u32 %s1346_s25, 4  ;;  %s43_s26 = int_to_ptr.vmem [resolvable:$true] %s42_s26 }
  0x19   :  { %s1284_s27 = scalar_lea.vmem %s43_s26, 49152  ;;  %p1289_p11 = scmp.lt.s32.totalorder %s43_s26, %s43_s26 }
  0x1a   :  { %p1285_p10 = scmp.ne.s32.totalorder %s43_s26, %s1284_s27  ;;  %p1290_p12 = scmp.lt.s32.totalorder %s1284_s27, %s1284_s27 }
  0x1c   :  { %p1291_p13 = por %p1290_p12, %p1289_p11 }
  0x1e   :  { %p1292_p0 = pnand %p1291_p13, %p1285_p10 }
  0x20   :  { %1295 = shalt.err (!%p1292_p0)
}
  0x21   :  { %s1347_s28 = smov 768   ;;  %s1348_s29 = smov 48  }
  0x22   :  { %48 = dma.hbm_to_vmem [thread:$0]  %s1420_s2, 49152, %s43_s26, [#allocation6], %s1347_s28, %s1347_s28, %s1348_s29  }
  0x23   :  { %s1349_s6 = smov [#allocation8]  }
  0x24   :  { %s54_s7 = sshll.u32 %s1349_s6, 4  ;;  %s55_s7 = int_to_ptr.vmem [resolvable:$true] %s54_s7 }
  0x25   :  { %s1304_s0 = scalar_lea.vmem %s55_s7, 12288  ;;  %p1309_p2 = scmp.lt.s32.totalorder %s55_s7, %s55_s7 }
  0x26   :  { %p1305_p1 = scmp.ne.s32.totalorder %s55_s7, %s1304_s0  ;;  %p1310_p3 = scmp.lt.s32.totalorder %s1304_s0, %s1304_s0 }
  0x28   :  { %p1311_p4 = por %p1310_p3, %p1309_p2 }
  0x2a   :  { %p1312_p5 = pnand %p1311_p4, %p1305_p1 }
  0x2c   :  { %1315 = shalt.err (!%p1312_p5)
}
  0x2d   :  { %60 = dma.hbm_to_vmem [thread:$0]  %s1421_s3, 12288, %s55_s7, [#allocation9], %s1347_s28, %s1347_s28, %s1348_s29  }
  0x2e   :  { %1336 = dma.done.wait [#allocation3], 512  }
  0x2f   :  { %1337 = vsyncadd [#allocation3], 4294966784 }
  0x30   :  { %1338 = dma.done.wait [#allocation6], 49280  }
  0x31   :  { %1339 = vsyncadd [#allocation6], 4294918016 }
  0x32   :  { %1340 = dma.done.wait [#allocation9], 12288  }
  0x33   :  { %1341 = vsyncadd [#allocation9], 4294955008  ;;  %v1350_v0 = vmov 0.0   ;;  %v555_v1 = vld [vmem:[#allocation8 + $0x2d8] sm:$0xff]  ;;  %v557_v2 = vld [vmem:[#allocation8 + $0x2e8] sm:$0xff]  ;;  %s1351_s2 = smov [#allocation10]  }
  0x34   :  { %624 = vmatprep.mubr.f32.mxu0 %v1350_v0  ;;  %695 = vmatprep.mubr.f32.mxu1 %v1350_v0  ;;  %v554_v3 = vld [vmem:[#allocation8 + $0x2d0] sm:$0xff]  ;;  %v556_v4 = vld [vmem:[#allocation8 + $0x2e0] sm:$0xff]  ;;  %v549_v5 = vld [vmem:[#allocation8 + $0x2a8] sm:$0xff]  ;;  %s1211_s3 = sshll.u32 %s1351_s2, 4  ;;  %s1212_s3 = int_to_ptr.vmem [resolvable:$true] %s1211_s3 }
  0x35   :  { %560 = vmatprep.subr.mxu0 %v555_v1  ;;  %631 = vmatprep.subr.mxu1 %v557_v2  ;;  %v551_v6 = vld [vmem:[#allocation8 + $0x2b8] sm:$0xff]  ;;  %v548_v7 = vld [vmem:[#allocation8 + $0x2a0] sm:$0xff]  ;;  %v550_v8 = vld [vmem:[#allocation8 + $0x2b0] sm:$0xff]  ;;  %s1316_s10 = scalar_lea.vmem %s1212_s3, 768  ;;  %p1321_p7 = scmp.lt.s32.totalorder %s1212_s3, %s1212_s3 }
  0x36   :  { %561 = vmatpush1.msra.mxu0 %v554_v3  ;;  %632 = vmatpush1.msra.mxu1 %v556_v4  ;;  %v543_v9 = vld [vmem:[#allocation8 + $0x278] sm:$0xff]  ;;  %v545_v10 = vld [vmem:[#allocation8 + $0x288] sm:$0xff]  ;;  %v542_v11 = vld [vmem:[#allocation8 + $0x270] sm:$0xff]  ;;  %p1317_p6 = scmp.ne.s32.totalorder %s1212_s3, %s1316_s10  ;;  %p1322_p8 = scmp.lt.s32.totalorder %s1316_s10, %s1316_s10 }
  0x37   :  { %562 = vmatprep.subr.mxu0 %v549_v5  ;;  %633 = vmatprep.subr.mxu1 %v551_v6  ;;  %v544_v12 = vld [vmem:[#allocation8 + $0x280] sm:$0xff]  ;;  %v537_v13 = vld [vmem:[#allocation8 + $0x248] sm:$0xff]  ;;  %v539_v14 = vld [vmem:[#allocation8 + $0x258] sm:$0xff] }
  0x38   :  { %563 = vmatpush1.msra.mxu0 %v548_v7  ;;  %634 = vmatpush1.msra.mxu1 %v550_v8  ;;  %v536_v15 = vld [vmem:[#allocation8 + $0x240] sm:$0xff]  ;;  %v538_v16 = vld [vmem:[#allocation8 + $0x250] sm:$0xff]  ;;  %v531_v17 = vld [vmem:[#allocation8 + $0x218] sm:$0xff]  ;;  %p1323_p9 = por %p1322_p8, %p1321_p7 }
  0x39   :  { %564 = vmatprep.subr.mxu0 %v543_v9  ;;  %635 = vmatprep.subr.mxu1 %v545_v10  ;;  %v533_v18 = vld [vmem:[#allocation8 + $0x228] sm:$0xff]  ;;  %v530_v19 = vld [vmem:[#allocation8 + $0x210] sm:$0xff]  ;;  %v532_v20 = vld [vmem:[#allocation8 + $0x220] sm:$0xff] }
  0x3a   :  { %565 = vmatpush1.msra.mxu0 %v542_v11  ;;  %636 = vmatpush1.msra.mxu1 %v544_v12  ;;  %v525_v21 = vld [vmem:[#allocation8 + $0x1e8] sm:$0xff]  ;;  %v527_v22 = vld [vmem:[#allocation8 + $0x1f8] sm:$0xff]  ;;  %v524_v23 = vld [vmem:[#allocation8 + $0x1e0] sm:$0xff]  ;;  %p1324_p10 = pnand %p1323_p9, %p1317_p6 }
  0x3b   :  { %566 = vmatprep.subr.mxu0 %v537_v13  ;;  %637 = vmatprep.subr.mxu1 %v539_v14  ;;  %v526_v24 = vld [vmem:[#allocation8 + $0x1f0] sm:$0xff]  ;;  %v519_v25 = vld [vmem:[#allocation8 + $0x1b8] sm:$0xff]  ;;  %v521_v26 = vld [vmem:[#allocation8 + $0x1c8] sm:$0xff] }
  0x3c   :  { %567 = vmatpush1.msra.mxu0 %v536_v15  ;;  %638 = vmatpush1.msra.mxu1 %v538_v16  ;;  %v518_v27 = vld [vmem:[#allocation8 + $0x1b0] sm:$0xff]  ;;  %v520_v28 = vld [vmem:[#allocation8 + $0x1c0] sm:$0xff]  ;;  %v513_v29 = vld [vmem:[#allocation8 + $0x188] sm:$0xff] }
  0x3d   :  { %568 = vmatprep.subr.mxu0 %v531_v17  ;;  %639 = vmatprep.subr.mxu1 %v533_v18  ;;  %v515_v30 = vld [vmem:[#allocation8 + $0x198] sm:$0xff]  ;;  %v512_v31 = vld [vmem:[#allocation8 + $0x180] sm:$0xff]  ;;  %v514_v32 = vld [vmem:[#allocation8 + $0x190] sm:$0xff] }
  0x3e   :  { %569 = vmatpush1.msra.mxu0 %v530_v19  ;;  %640 = vmatpush1.msra.mxu1 %v532_v20  ;;  %v507_v33 = vld [vmem:[#allocation8 + $0x158] sm:$0xff]  ;;  %v509_v34 = vld [vmem:[#allocation8 + $0x168] sm:$0xff]  ;;  %v506_v35 = vld [vmem:[#allocation8 + $0x150] sm:$0xff] }
  0x3f   :  { %570 = vmatprep.subr.mxu0 %v525_v21  ;;  %641 = vmatprep.subr.mxu1 %v527_v22  ;;  %v508_v36 = vld [vmem:[#allocation8 + $0x160] sm:$0xff]  ;;  %v501_v37 = vld [vmem:[#allocation8 + $0x128] sm:$0xff]  ;;  %v503_v38 = vld [vmem:[#allocation8 + $0x138] sm:$0xff] }
  0x40   :  { %571 = vmatpush1.msra.mxu0 %v524_v23  ;;  %642 = vmatpush1.msra.mxu1 %v526_v24  ;;  %v500_v39 = vld [vmem:[#allocation8 + $0x120] sm:$0xff]  ;;  %v502_v40 = vld [vmem:[#allocation8 + $0x130] sm:$0xff]  ;;  %v495_v41 = vld [vmem:[#allocation8 + $0xf8] sm:$0xff] }
  0x41   :  { %572 = vmatprep.subr.mxu0 %v519_v25  ;;  %643 = vmatprep.subr.mxu1 %v521_v26  ;;  %v497_v42 = vld [vmem:[#allocation8 + $0x108] sm:$0xff]  ;;  %v494_v43 = vld [vmem:[#allocation8 + $0xf0] sm:$0xff]  ;;  %v496_v44 = vld [vmem:[#allocation8 + $0x100] sm:$0xff] }
  0x42   :  { %573 = vmatpush1.msra.mxu0 %v518_v27  ;;  %644 = vmatpush1.msra.mxu1 %v520_v28  ;;  %v489_v45 = vld [vmem:[#allocation8 + $0xc8] sm:$0xff]  ;;  %v491_v46 = vld [vmem:[#allocation8 + $0xd8] sm:$0xff]  ;;  %v488_v47 = vld [vmem:[#allocation8 + $0xc0] sm:$0xff] }
  0x43   :  { %574 = vmatprep.subr.mxu0 %v513_v29  ;;  %645 = vmatprep.subr.mxu1 %v515_v30  ;;  %v490_v48 = vld [vmem:[#allocation8 + $0xd0] sm:$0xff]  ;;  %v483_v49 = vld [vmem:[#allocation8 + $0x98] sm:$0xff]  ;;  %v485_v50 = vld [vmem:[#allocation8 + $0xa8] sm:$0xff] }
  0x44   :  { %575 = vmatpush1.msra.mxu0 %v512_v31  ;;  %646 = vmatpush1.msra.mxu1 %v514_v32  ;;  %v482_v51 = vld [vmem:[#allocation8 + $0x90] sm:$0xff]  ;;  %v484_v52 = vld [vmem:[#allocation8 + $0xa0] sm:$0xff]  ;;  %v477_v53 = vld [vmem:[#allocation8 + $0x68] sm:$0xff] }
  0x45   :  { %576 = vmatprep.subr.mxu0 %v507_v33  ;;  %647 = vmatprep.subr.mxu1 %v509_v34  ;;  %v479_v54 = vld [vmem:[#allocation8 + $0x78] sm:$0xff]  ;;  %v476_v55 = vld [vmem:[#allocation8 + $0x60] sm:$0xff]  ;;  %v478_v56 = vld [vmem:[#allocation8 + $0x70] sm:$0xff] }
  0x46   :  { %577 = vmatpush1.msra.mxu0 %v506_v35  ;;  %648 = vmatpush1.msra.mxu1 %v508_v36  ;;  %v471_v57 = vld [vmem:[#allocation8 + $0x38] sm:$0xff]  ;;  %v473_v58 = vld [vmem:[#allocation8 + $0x48] sm:$0xff]  ;;  %v470_v59 = vld [vmem:[#allocation8 + $0x30] sm:$0xff] }
  0x47   :  { %578 = vmatprep.subr.mxu0 %v501_v37  ;;  %649 = vmatprep.subr.mxu1 %v503_v38  ;;  %v472_v60 = vld [vmem:[#allocation8 + $0x40] sm:$0xff]  ;;  %v465_v61 = vld [vmem:[#allocation8 + $0x8] sm:$0xff]  ;;  %v467_v62 = vld [vmem:[#allocation8 + $0x18] sm:$0xff] }
  0x48   :  { %579 = vmatpush1.msra.mxu0 %v500_v39  ;;  %650 = vmatpush1.msra.mxu1 %v502_v40  ;;  %v464_v63 = vld [vmem:[#allocation8] sm:$0xff]  ;;  %v466_v1 = vld [vmem:[#allocation8 + $0x10] sm:$0xff]  ;;  %v1391_v2 = vld [vmem:[#allocation5] sm:$0xff] }
  0x49   :  { %580 = vmatprep.subr.mxu0 %v495_v41  ;;  %651 = vmatprep.subr.mxu1 %v497_v42  ;;  %v559_v3 = vld [vmem:[#allocation8 + $0x2f8] sm:$0xff]  ;;  %v558_v5 = vld [vmem:[#allocation8 + $0x2f0] sm:$0xff]  ;;  %v553_v7 = vld [vmem:[#allocation8 + $0x2c8] sm:$0xff] }
  0x4a   :  { %581 = vmatpush1.msra.mxu0 %v494_v43  ;;  %652 = vmatpush1.msra.mxu1 %v496_v44  ;;  %v170_v4 = vld [vmem:[#allocation7 + $0x2d8] sm:$0xff]  ;;  %v169_v6 = vld [vmem:[#allocation7 + $0x2d0] sm:$0xff]  ;;  %v164_v8 = vld [vmem:[#allocation7 + $0x2a8] sm:$0xff] }
  0x4b   :  { %582 = vmatprep.subr.mxu0 %v489_v45  ;;  %653 = vmatprep.subr.mxu1 %v491_v46  ;;  %v552_v9 = vld [vmem:[#allocation8 + $0x2c0] sm:$0xff]  ;;  %v547_v11 = vld [vmem:[#allocation8 + $0x298] sm:$0xff]  ;;  %v546_v13 = vld [vmem:[#allocation8 + $0x290] sm:$0xff] }
  0x4c   :  { %583 = vmatpush1.msra.mxu0 %v488_v47  ;;  %654 = vmatpush1.msra.mxu1 %v490_v48  ;;  %v163_v10 = vld [vmem:[#allocation7 + $0x2a0] sm:$0xff]  ;;  %v158_v12 = vld [vmem:[#allocation7 + $0x278] sm:$0xff]  ;;  %v157_v14 = vld [vmem:[#allocation7 + $0x270] sm:$0xff] }
  0x4d   :  { %584 = vmatprep.subr.mxu0 %v483_v49  ;;  %655 = vmatprep.subr.mxu1 %v485_v50  ;;  %v541_v15 = vld [vmem:[#allocation8 + $0x268] sm:$0xff]  ;;  %v540_v17 = vld [vmem:[#allocation8 + $0x260] sm:$0xff]  ;;  %v535_v19 = vld [vmem:[#allocation8 + $0x238] sm:$0xff] }
  0x4e   :  { %585 = vmatpush1.msra.mxu0 %v482_v51  ;;  %656 = vmatpush1.msra.mxu1 %v484_v52  ;;  %v152_v16 = vld [vmem:[#allocation7 + $0x248] sm:$0xff]  ;;  %v151_v18 = vld [vmem:[#allocation7 + $0x240] sm:$0xff]  ;;  %v146_v20 = vld [vmem:[#allocation7 + $0x218] sm:$0xff] }
  0x4f   :  { %586 = vmatprep.subr.mxu0 %v477_v53  ;;  %657 = vmatprep.subr.mxu1 %v479_v54  ;;  %v534_v21 = vld [vmem:[#allocation8 + $0x230] sm:$0xff]  ;;  %v529_v23 = vld [vmem:[#allocation8 + $0x208] sm:$0xff]  ;;  %v528_v25 = vld [vmem:[#allocation8 + $0x200] sm:$0xff] }
  0x50   :  { %587 = vmatpush1.msra.mxu0 %v476_v55  ;;  %658 = vmatpush1.msra.mxu1 %v478_v56  ;;  %v145_v22 = vld [vmem:[#allocation7 + $0x210] sm:$0xff]  ;;  %v140_v24 = vld [vmem:[#allocation7 + $0x1e8] sm:$0xff]  ;;  %v139_v26 = vld [vmem:[#allocation7 + $0x1e0] sm:$0xff] }
  0x51   :  { %588 = vmatprep.subr.mxu0 %v471_v57  ;;  %659 = vmatprep.subr.mxu1 %v473_v58  ;;  %v523_v27 = vld [vmem:[#allocation8 + $0x1d8] sm:$0xff]  ;;  %v522_v29 = vld [vmem:[#allocation8 + $0x1d0] sm:$0xff]  ;;  %v517_v31 = vld [vmem:[#allocation8 + $0x1a8] sm:$0xff] }
  0x52   :  { %589 = vmatpush1.msra.mxu0 %v470_v59  ;;  %660 = vmatpush1.msra.mxu1 %v472_v60  ;;  %v134_v28 = vld [vmem:[#allocation7 + $0x1b8] sm:$0xff]  ;;  %v133_v30 = vld [vmem:[#allocation7 + $0x1b0] sm:$0xff]  ;;  %v128_v32 = vld [vmem:[#allocation7 + $0x188] sm:$0xff] }
  0x53   :  { %590 = vmatprep.subr.mxu0 %v465_v61  ;;  %661 = vmatprep.subr.mxu1 %v467_v62  ;;  %v516_v33 = vld [vmem:[#allocation8 + $0x1a0] sm:$0xff]  ;;  %v511_v35 = vld [vmem:[#allocation8 + $0x178] sm:$0xff]  ;;  %v510_v37 = vld [vmem:[#allocation8 + $0x170] sm:$0xff] }
  0x54   :  { %591 = vmatpush1.msra.mxu0 %v464_v63  ;;  %662 = vmatpush1.msra.mxu1 %v466_v1  ;;  %v127_v34 = vld [vmem:[#allocation7 + $0x180] sm:$0xff]  ;;  %v122_v36 = vld [vmem:[#allocation7 + $0x158] sm:$0xff]  ;;  %v121_v38 = vld [vmem:[#allocation7 + $0x150] sm:$0xff] }
  0x55   :  { %625 = vmatmul.mubr.f32.vlgmr.msra.gmra.mxu0 %v1391_v2  ;;  %702 = vmatprep.subr.mxu0 %v559_v3  ;;  %v505_v39 = vld [vmem:[#allocation8 + $0x148] sm:$0xff]  ;;  %v504_v41 = vld [vmem:[#allocation8 + $0x140] sm:$0xff]  ;;  %v499_v43 = vld [vmem:[#allocation8 + $0x118] sm:$0xff] }
  0x56   :  { %773 = vmatprep.subr.mxu1 %v170_v4  ;;  %696 = vmatmul.mubr.f32.vlgmr.msra.gmra.mxu1 %v1391_v2  ;;  %v116_v40 = vld [vmem:[#allocation7 + $0x128] sm:$0xff]  ;;  %v115_v42 = vld [vmem:[#allocation7 + $0x120] sm:$0xff]  ;;  %v110_v44 = vld [vmem:[#allocation7 + $0xf8] sm:$0xff] }
  0x57   :  { %703 = vmatpush1.msra.mxu0 %v558_v5  ;;  %774 = vmatpush1.msra.mxu1 %v169_v6  ;;  %v498_v45 = vld [vmem:[#allocation8 + $0x110] sm:$0xff]  ;;  %v493_v47 = vld [vmem:[#allocation8 + $0xe8] sm:$0xff]  ;;  %v492_v49 = vld [vmem:[#allocation8 + $0xe0] sm:$0xff] }
  0x58   :  { %704 = vmatprep.subr.mxu0 %v553_v7  ;;  %775 = vmatprep.subr.mxu1 %v164_v8  ;;  %v109_v46 = vld [vmem:[#allocation7 + $0xf0] sm:$0xff]  ;;  %v104_v48 = vld [vmem:[#allocation7 + $0xc8] sm:$0xff]  ;;  %v103_v50 = vld [vmem:[#allocation7 + $0xc0] sm:$0xff] }
  0x59   :  { %705 = vmatpush1.msra.mxu0 %v552_v9  ;;  %776 = vmatpush1.msra.mxu1 %v163_v10  ;;  %v487_v51 = vld [vmem:[#allocation8 + $0xb8] sm:$0xff]  ;;  %v486_v53 = vld [vmem:[#allocation8 + $0xb0] sm:$0xff]  ;;  %v481_v55 = vld [vmem:[#allocation8 + $0x88] sm:$0xff] }
  0x5a   :  { %706 = vmatprep.subr.mxu0 %v547_v11  ;;  %777 = vmatprep.subr.mxu1 %v158_v12  ;;  %v98_v52 = vld [vmem:[#allocation7 + $0x98] sm:$0xff]  ;;  %v97_v54 = vld [vmem:[#allocation7 + $0x90] sm:$0xff]  ;;  %v92_v56 = vld [vmem:[#allocation7 + $0x68] sm:$0xff] }
  0x5b   :  { %707 = vmatpush1.msra.mxu0 %v546_v13  ;;  %778 = vmatpush1.msra.mxu1 %v157_v14  ;;  %v480_v57 = vld [vmem:[#allocation8 + $0x80] sm:$0xff]  ;;  %v475_v59 = vld [vmem:[#allocation8 + $0x58] sm:$0xff]  ;;  %v474_v61 = vld [vmem:[#allocation8 + $0x50] sm:$0xff] }
  0x5c   :  { %708 = vmatprep.subr.mxu0 %v541_v15  ;;  %779 = vmatprep.subr.mxu1 %v152_v16  ;;  %v91_v58 = vld [vmem:[#allocation7 + $0x60] sm:$0xff]  ;;  %v86_v60 = vld [vmem:[#allocation7 + $0x38] sm:$0xff]  ;;  %v85_v62 = vld [vmem:[#allocation7 + $0x30] sm:$0xff] }
  0x5d   :  { %709 = vmatpush1.msra.mxu0 %v540_v17  ;;  %780 = vmatpush1.msra.mxu1 %v151_v18  ;;  %v469_v63 = vld [vmem:[#allocation8 + $0x28] sm:$0xff]  ;;  %v468_v3 = vld [vmem:[#allocation8 + $0x20] sm:$0xff]  ;;  %v266_v5 = vld [vmem:[#allocation7 + $0x5d8] sm:$0xff] }
  0x5e   :  { %710 = vmatprep.subr.mxu0 %v535_v19  ;;  %781 = vmatprep.subr.mxu1 %v146_v20  ;;  %v80_v1 = vld [vmem:[#allocation7 + $0x8] sm:$0xff]  ;;  %v79_v4 = vld [vmem:[#allocation7] sm:$0xff]  ;;  %v362_v6 = vld [vmem:[#allocation7 + $0x8d8] sm:$0xff] }
  0x5f   :  { %711 = vmatpush1.msra.mxu0 %v534_v21  ;;  %782 = vmatpush1.msra.mxu1 %v145_v22  ;;  %v265_v7 = vld [vmem:[#allocation7 + $0x5d0] sm:$0xff]  ;;  %v260_v9 = vld [vmem:[#allocation7 + $0x5a8] sm:$0xff]  ;;  %v259_v11 = vld [vmem:[#allocation7 + $0x5a0] sm:$0xff] }
  0x60   :  { %712 = vmatprep.subr.mxu0 %v529_v23  ;;  %783 = vmatprep.subr.mxu1 %v140_v24  ;;  %v361_v8 = vld [vmem:[#allocation7 + $0x8d0] sm:$0xff]  ;;  %v356_v10 = vld [vmem:[#allocation7 + $0x8a8] sm:$0xff]  ;;  %v355_v12 = vld [vmem:[#allocation7 + $0x8a0] sm:$0xff] }
  0x61   :  { %713 = vmatpush1.msra.mxu0 %v528_v25  ;;  %784 = vmatpush1.msra.mxu1 %v139_v26  ;;  %v254_v13 = vld [vmem:[#allocation7 + $0x578] sm:$0xff]  ;;  %v253_v15 = vld [vmem:[#allocation7 + $0x570] sm:$0xff]  ;;  %v344_v17 = vld [vmem:[#allocation7 + $0x848] sm:$0xff] }
  0x62   :  { %714 = vmatprep.subr.mxu0 %v523_v27  ;;  %785 = vmatprep.subr.mxu1 %v134_v28  ;;  %v350_v14 = vld [vmem:[#allocation7 + $0x878] sm:$0xff]  ;;  %v349_v16 = vld [vmem:[#allocation7 + $0x870] sm:$0xff]  ;;  %v343_v18 = vld [vmem:[#allocation7 + $0x840] sm:$0xff] }
  0x63   :  { %715 = vmatpush1.msra.mxu0 %v522_v29  ;;  %786 = vmatpush1.msra.mxu1 %v133_v30  ;;  %v242_v19 = vld [vmem:[#allocation7 + $0x518] sm:$0xff]  ;;  %v241_v21 = vld [vmem:[#allocation7 + $0x510] sm:$0xff]  ;;  %v236_v23 = vld [vmem:[#allocation7 + $0x4e8] sm:$0xff] }
  0x64   :  { %716 = vmatprep.subr.mxu0 %v517_v31  ;;  %787 = vmatprep.subr.mxu1 %v128_v32  ;;  %v338_v20 = vld [vmem:[#allocation7 + $0x818] sm:$0xff]  ;;  %v337_v22 = vld [vmem:[#allocation7 + $0x810] sm:$0xff]  ;;  %v332_v24 = vld [vmem:[#allocation7 + $0x7e8] sm:$0xff] }
  0x65   :  { %717 = vmatpush1.msra.mxu0 %v516_v33  ;;  %788 = vmatpush1.msra.mxu1 %v127_v34  ;;  %v235_v25 = vld [vmem:[#allocation7 + $0x4e0] sm:$0xff]  ;;  %v230_v27 = vld [vmem:[#allocation7 + $0x4b8] sm:$0xff]  ;;  %v229_v29 = vld [vmem:[#allocation7 + $0x4b0] sm:$0xff] }
  0x66   :  { %718 = vmatprep.subr.mxu0 %v511_v35  ;;  %789 = vmatprep.subr.mxu1 %v122_v36  ;;  %v331_v26 = vld [vmem:[#allocation7 + $0x7e0] sm:$0xff]  ;;  %v326_v28 = vld [vmem:[#allocation7 + $0x7b8] sm:$0xff]  ;;  %v325_v30 = vld [vmem:[#allocation7 + $0x7b0] sm:$0xff] }
  0x67   :  { %719 = vmatpush1.msra.mxu0 %v510_v37  ;;  %790 = vmatpush1.msra.mxu1 %v121_v38  ;;  %v224_v31 = vld [vmem:[#allocation7 + $0x488] sm:$0xff]  ;;  %v223_v33 = vld [vmem:[#allocation7 + $0x480] sm:$0xff]  ;;  %v218_v35 = vld [vmem:[#allocation7 + $0x458] sm:$0xff] }
  0x68   :  { %720 = vmatprep.subr.mxu0 %v505_v39  ;;  %791 = vmatprep.subr.mxu1 %v116_v40  ;;  %v320_v32 = vld [vmem:[#allocation7 + $0x788] sm:$0xff]  ;;  %v319_v34 = vld [vmem:[#allocation7 + $0x780] sm:$0xff]  ;;  %v314_v36 = vld [vmem:[#allocation7 + $0x758] sm:$0xff] }
  0x69   :  { %721 = vmatpush1.msra.mxu0 %v504_v41  ;;  %792 = vmatpush1.msra.mxu1 %v115_v42  ;;  %v217_v37 = vld [vmem:[#allocation7 + $0x450] sm:$0xff]  ;;  %v212_v39 = vld [vmem:[#allocation7 + $0x428] sm:$0xff]  ;;  %v211_v41 = vld [vmem:[#allocation7 + $0x420] sm:$0xff] }
  0x6a   :  { %722 = vmatprep.subr.mxu0 %v499_v43  ;;  %793 = vmatprep.subr.mxu1 %v110_v44  ;;  %v313_v38 = vld [vmem:[#allocation7 + $0x750] sm:$0xff]  ;;  %v308_v40 = vld [vmem:[#allocation7 + $0x728] sm:$0xff]  ;;  %v307_v42 = vld [vmem:[#allocation7 + $0x720] sm:$0xff] }
  0x6b   :  { %723 = vmatpush1.msra.mxu0 %v498_v45  ;;  %794 = vmatpush1.msra.mxu1 %v109_v46  ;;  %v206_v43 = vld [vmem:[#allocation7 + $0x3f8] sm:$0xff]  ;;  %v205_v45 = vld [vmem:[#allocation7 + $0x3f0] sm:$0xff] }
  0x6c   :  { %724 = vmatprep.subr.mxu0 %v493_v47  ;;  %795 = vmatprep.subr.mxu1 %v104_v48  ;;  %v302_v44 = vld [vmem:[#allocation7 + $0x6f8] sm:$0xff]  ;;  %v301_v46 = vld [vmem:[#allocation7 + $0x6f0] sm:$0xff]  ;;  %v200_v47 = vld [vmem:[#allocation7 + $0x3c8] sm:$0xff] }
  0x6d   :  { %725 = vmatpush1.msra.mxu0 %v492_v49  ;;  %796 = vmatpush1.msra.mxu1 %v103_v50  ;;  %v296_v48 = vld [vmem:[#allocation7 + $0x6c8] sm:$0xff]  ;;  %v199_v49 = vld [vmem:[#allocation7 + $0x3c0] sm:$0xff] }
  0x6e   :  { %726 = vmatprep.subr.mxu0 %v487_v51  ;;  %797 = vmatprep.subr.mxu1 %v98_v52  ;;  %v295_v50 = vld [vmem:[#allocation7 + $0x6c0] sm:$0xff]  ;;  %v194_v51 = vld [vmem:[#allocation7 + $0x398] sm:$0xff] }
  0x6f   :  { %727 = vmatpush1.msra.mxu0 %v486_v53  ;;  %798 = vmatpush1.msra.mxu1 %v97_v54  ;;  %v290_v52 = vld [vmem:[#allocation7 + $0x698] sm:$0xff]  ;;  %v193_v53 = vld [vmem:[#allocation7 + $0x390] sm:$0xff] }
  0x70   :  { %728 = vmatprep.subr.mxu0 %v481_v55  ;;  %799 = vmatprep.subr.mxu1 %v92_v56  ;;  %v289_v54 = vld [vmem:[#allocation7 + $0x690] sm:$0xff]  ;;  %v188_v55 = vld [vmem:[#allocation7 + $0x368] sm:$0xff] }
  0x71   :  { %729 = vmatpush1.msra.mxu0 %v480_v57  ;;  %800 = vmatpush1.msra.mxu1 %v91_v58  ;;  %v284_v56 = vld [vmem:[#allocation7 + $0x668] sm:$0xff]  ;;  %v187_v57 = vld [vmem:[#allocation7 + $0x360] sm:$0xff] }
  0x72   :  { %730 = vmatprep.subr.mxu0 %v475_v59  ;;  %801 = vmatprep.subr.mxu1 %v86_v60  ;;  %v283_v58 = vld [vmem:[#allocation7 + $0x660] sm:$0xff]  ;;  %v182_v59 = vld [vmem:[#allocation7 + $0x338] sm:$0xff] }
  0x73   :  { %731 = vmatpush1.msra.mxu0 %v474_v61  ;;  %802 = vmatpush1.msra.mxu1 %v85_v62  ;;  %v278_v60 = vld [vmem:[#allocation7 + $0x638] sm:$0xff]  ;;  %v181_v61 = vld [vmem:[#allocation7 + $0x330] sm:$0xff] }
  0x74   :  { %732 = vmatprep.subr.mxu0 %v469_v63  ;;  %803 = vmatprep.subr.mxu1 %v80_v1  ;;  %v277_v62 = vld [vmem:[#allocation7 + $0x630] sm:$0xff]  ;;  %v176_v63 = vld [vmem:[#allocation7 + $0x308] sm:$0xff] }
  0x75   :  { %733 = vmatpush1.msra.mxu0 %v468_v3  ;;  %766 = vmatprep.mubr.f32.mxu0 %v1350_v0  ;;  %v248_v0 = vld [vmem:[#allocation7 + $0x548] sm:$0xff]  ;;  %v175_v3 = vld [vmem:[#allocation7 + $0x300] sm:$0xff] }
  0x76   :  { %804 = vmatpush1.msra.mxu1 %v79_v4  ;;  %767 = vmatmul.mubr.f32.vlgmr.msra.gmra.mxu0 %v1391_v2  ;;  %v247_v2 = vld [vmem:[#allocation7 + $0x540] sm:$0xff]  ;;  %v272_v1 = vld [vmem:[#allocation7 + $0x608] sm:$0xff] }
  0x77   :  { %805 = vmatprep.subr.mxu1 %v266_v5  ;;  %844 = vmatprep.subr.mxu0 %v362_v6  ;;  %v1397_v4 = vld [vmem:[#allocation2 + $0x8] sm:$0xff]  ;;  %v1399_v6 = vld [vmem:[#allocation2] sm:$0xff] }
  0x78   :  { %806 = vmatpush2.msra.mxu1 %v265_v7  ;;  %845 = vmatpush1.msra.mxu0 %v361_v8  ;;  %v271_v5 = vld [vmem:[#allocation7 + $0x600] sm:$0xff]  ;;  %v458_v7 = vld [vmem:[#allocation7 + $0xbd8] sm:$0xff]  ;;  %v172_v8 = vld [vmem:[#allocation7 + $0x2e8] sm:$0xff] }
  0x79   :  { %807 = vmatprep.subr.mxu1 %v260_v9  ;;  %846 = vmatprep.subr.mxu0 %v356_v10  ;;  %v457_v9 = vld [vmem:[#allocation7 + $0xbd0] sm:$0xff]  ;;  %v171_v10 = vld [vmem:[#allocation7 + $0x2e0] sm:$0xff] }
  0x7a   :  { %808 = vmatpush2.msra.mxu1 %v259_v11  ;;  %847 = vmatpush1.msra.mxu0 %v355_v12  ;;  %v452_v11 = vld [vmem:[#allocation7 + $0xba8] sm:$0xff]  ;;  %v166_v12 = vld [vmem:[#allocation7 + $0x2b8] sm:$0xff] }
  0x7b   :  { %809 = vmatprep.subr.mxu1 %v254_v13  ;;  %848 = vmatprep.subr.mxu0 %v350_v14  ;;  %v451_v13 = vld [vmem:[#allocation7 + $0xba0] sm:$0xff]  ;;  %v165_v14 = vld [vmem:[#allocation7 + $0x2b0] sm:$0xff] }
  0x7c   :  { %810 = vmatpush2.msra.mxu1 %v253_v15  ;;  %849 = vmatpush1.msra.mxu0 %v349_v16  ;;  %v446_v15 = vld [vmem:[#allocation7 + $0xb78] sm:$0xff]  ;;  %v160_v16 = vld [vmem:[#allocation7 + $0x288] sm:$0xff] }
  0x7d   :  { %811 = vmatprep.subr.mxu1 %v248_v0  ;;  %850 = vmatprep.subr.mxu0 %v344_v17  ;;  %v445_v0 = vld [vmem:[#allocation7 + $0xb70] sm:$0xff]  ;;  %v159_v17 = vld [vmem:[#allocation7 + $0x280] sm:$0xff] }
  0x7e   :  { %812 = vmatpush2.msra.mxu1 %v247_v2  ;;  %851 = vmatpush1.msra.mxu0 %v343_v18  ;;  %v440_v2 = vld [vmem:[#allocation7 + $0xb48] sm:$0xff]  ;;  %v154_v18 = vld [vmem:[#allocation7 + $0x258] sm:$0xff] }
  0x7f   :  { %813 = vmatprep.subr.mxu1 %v242_v19  ;;  %852 = vmatprep.subr.mxu0 %v338_v20  ;;  %v439_v19 = vld [vmem:[#allocation7 + $0xb40] sm:$0xff]  ;;  %v153_v20 = vld [vmem:[#allocation7 + $0x250] sm:$0xff] }
  0x80   :  { %814 = vmatpush2.msra.mxu1 %v241_v21  ;;  %853 = vmatpush1.msra.mxu0 %v337_v22  ;;  %v434_v21 = vld [vmem:[#allocation7 + $0xb18] sm:$0xff]  ;;  %v148_v22 = vld [vmem:[#allocation7 + $0x228] sm:$0xff] }
  0x81   :  { %815 = vmatprep.subr.mxu1 %v236_v23  ;;  %854 = vmatprep.subr.mxu0 %v332_v24  ;;  %v433_v23 = vld [vmem:[#allocation7 + $0xb10] sm:$0xff]  ;;  %v147_v24 = vld [vmem:[#allocation7 + $0x220] sm:$0xff] }
  0x82   :  { %816 = vmatpush2.msra.mxu1 %v235_v25  ;;  %855 = vmatpush1.msra.mxu0 %v331_v26  ;;  %v428_v25 = vld [vmem:[#allocation7 + $0xae8] sm:$0xff]  ;;  %v142_v26 = vld [vmem:[#allocation7 + $0x1f8] sm:$0xff] }
  0x83   :  { %817 = vmatprep.subr.mxu1 %v230_v27  ;;  %856 = vmatprep.subr.mxu0 %v326_v28  ;;  %v427_v27 = vld [vmem:[#allocation7 + $0xae0] sm:$0xff]  ;;  %v141_v28 = vld [vmem:[#allocation7 + $0x1f0] sm:$0xff] }
  0x84   :  { %818 = vmatpush2.msra.mxu1 %v229_v29  ;;  %857 = vmatpush1.msra.mxu0 %v325_v30  ;;  %v422_v29 = vld [vmem:[#allocation7 + $0xab8] sm:$0xff]  ;;  %v136_v30 = vld [vmem:[#allocation7 + $0x1c8] sm:$0xff] }
  0x85   :  { %819 = vmatprep.subr.mxu1 %v224_v31  ;;  %858 = vmatprep.subr.mxu0 %v320_v32  ;;  %v421_v31 = vld [vmem:[#allocation7 + $0xab0] sm:$0xff]  ;;  %v135_v32 = vld [vmem:[#allocation7 + $0x1c0] sm:$0xff] }
  0x86   :  { %820 = vmatpush2.msra.mxu1 %v223_v33  ;;  %859 = vmatpush1.msra.mxu0 %v319_v34  ;;  %v416_v33 = vld [vmem:[#allocation7 + $0xa88] sm:$0xff]  ;;  %v130_v34 = vld [vmem:[#allocation7 + $0x198] sm:$0xff] }
  0x87   :  { %821 = vmatprep.subr.mxu1 %v218_v35  ;;  %860 = vmatprep.subr.mxu0 %v314_v36  ;;  %v415_v35 = vld [vmem:[#allocation7 + $0xa80] sm:$0xff]  ;;  %v129_v36 = vld [vmem:[#allocation7 + $0x190] sm:$0xff] }
  0x88   :  { %822 = vmatpush2.msra.mxu1 %v217_v37  ;;  %861 = vmatpush1.msra.mxu0 %v313_v38  ;;  %v410_v37 = vld [vmem:[#allocation7 + $0xa58] sm:$0xff]  ;;  %v124_v38 = vld [vmem:[#allocation7 + $0x168] sm:$0xff] }
  0x89   :  { %823 = vmatprep.subr.mxu1 %v212_v39  ;;  %862 = vmatprep.subr.mxu0 %v308_v40  ;;  %v409_v39 = vld [vmem:[#allocation7 + $0xa50] sm:$0xff]  ;;  %v123_v40 = vld [vmem:[#allocation7 + $0x160] sm:$0xff] }
  0x8a   :  { %824 = vmatpush2.msra.mxu1 %v211_v41  ;;  %863 = vmatpush1.msra.mxu0 %v307_v42  ;;  %v404_v41 = vld [vmem:[#allocation7 + $0xa28] sm:$0xff]  ;;  %v118_v42 = vld [vmem:[#allocation7 + $0x138] sm:$0xff] }
  0x8b   :  { %825 = vmatprep.subr.mxu1 %v206_v43  ;;  %864 = vmatprep.subr.mxu0 %v302_v44  ;;  %v403_v43 = vld [vmem:[#allocation7 + $0xa20] sm:$0xff]  ;;  %v117_v44 = vld [vmem:[#allocation7 + $0x130] sm:$0xff] }
  0x8c   :  { %826 = vmatpush2.msra.mxu1 %v205_v45  ;;  %865 = vmatpush1.msra.mxu0 %v301_v46  ;;  %v398_v45 = vld [vmem:[#allocation7 + $0x9f8] sm:$0xff]  ;;  %v112_v46 = vld [vmem:[#allocation7 + $0x108] sm:$0xff] }
  0x8d   :  { %827 = vmatprep.subr.mxu1 %v200_v47  ;;  %866 = vmatprep.subr.mxu0 %v296_v48  ;;  %v397_v47 = vld [vmem:[#allocation7 + $0x9f0] sm:$0xff]  ;;  %v111_v48 = vld [vmem:[#allocation7 + $0x100] sm:$0xff] }
  0x8e   :  { %828 = vmatpush2.msra.mxu1 %v199_v49  ;;  %867 = vmatpush1.msra.mxu0 %v295_v50  ;;  %v392_v49 = vld [vmem:[#allocation7 + $0x9c8] sm:$0xff]  ;;  %v106_v50 = vld [vmem:[#allocation7 + $0xd8] sm:$0xff] }
  0x8f   :  { %829 = vmatprep.subr.mxu1 %v194_v51  ;;  %868 = vmatprep.subr.mxu0 %v290_v52  ;;  %v391_v51 = vld [vmem:[#allocation7 + $0x9c0] sm:$0xff]  ;;  %v105_v52 = vld [vmem:[#allocation7 + $0xd0] sm:$0xff] }
  0x90   :  { %830 = vmatpush2.msra.mxu1 %v193_v53  ;;  %869 = vmatpush1.msra.mxu0 %v289_v54  ;;  %v386_v53 = vld [vmem:[#allocation7 + $0x998] sm:$0xff]  ;;  %v100_v54 = vld [vmem:[#allocation7 + $0xa8] sm:$0xff] }
  0x91   :  { %831 = vmatprep.subr.mxu1 %v188_v55  ;;  %870 = vmatprep.subr.mxu0 %v284_v56  ;;  %v385_v55 = vld [vmem:[#allocation7 + $0x990] sm:$0xff]  ;;  %v99_v56 = vld [vmem:[#allocation7 + $0xa0] sm:$0xff] }
  0x92   :  { %832 = vmatpush2.msra.mxu1 %v187_v57  ;;  %871 = vmatpush1.msra.mxu0 %v283_v58  ;;  %v380_v57 = vld [vmem:[#allocation7 + $0x968] sm:$0xff]  ;;  %v94_v58 = vld [vmem:[#allocation7 + $0x78] sm:$0xff] }
  0x93   :  { %833 = vmatprep.subr.mxu1 %v182_v59  ;;  %872 = vmatprep.subr.mxu0 %v278_v60  ;;  %v379_v59 = vld [vmem:[#allocation7 + $0x960] sm:$0xff]  ;;  %v93_v60 = vld [vmem:[#allocation7 + $0x70] sm:$0xff] }
  0x94   :  { %834 = vmatpush2.msra.mxu1 %v181_v61  ;;  %873 = vmatpush1.msra.mxu0 %v277_v62  ;;  %v374_v61 = vld [vmem:[#allocation7 + $0x938] sm:$0xff]  ;;  %v88_v62 = vld [vmem:[#allocation7 + $0x48] sm:$0xff] }
  0x95   :  { %835 = vmatprep.subr.mxu1 %v176_v63  ;;  %874 = vmatprep.subr.mxu0 %v272_v1  ;;  %v373_v63 = vld [vmem:[#allocation7 + $0x930] sm:$0xff]  ;;  %v87_v1 = vld [vmem:[#allocation7 + $0x40] sm:$0xff] }
  0x96   :  { %836 = vmatpush2.msra.mxu1 %v175_v3  ;;  %837 = vmatprep.mubr.f32.mxu1 %v1397_v4  ;;  %v368_v3 = vld [vmem:[#allocation7 + $0x908] sm:$0xff] }
  0x97   :  { %875 = vmatpush1.msra.mxu0 %v271_v5  ;;  %838 = vmatmul.mubr.f32.vlgmr.msra.gmra.mxu1 %v1399_v6  ;;  %v82_v5 = vld [vmem:[#allocation7 + $0x18] sm:$0xff] }
  0x98   :  { %876 = vmatprep.subr.mxu0 %v458_v7  ;;  %915 = vmatprep.subr.mxu1 %v172_v8  ;;  %v367_v7 = vld [vmem:[#allocation7 + $0x900] sm:$0xff]  ;;  %v1403_v8 = vld [vmem:[#allocation2 + $0x18] sm:$0xff] }
  0x99   :  { %877 = vmatpush2.msra.mxu0 %v457_v9  ;;  %916 = vmatpush1.msra.mxu1 %v171_v10  ;;  %v81_v9 = vld [vmem:[#allocation7 + $0x10] sm:$0xff]  ;;  %v1405_v10 = vld [vmem:[#allocation2 + $0x10] sm:$0xff] }
  0x9a   :  { %878 = vmatprep.subr.mxu0 %v452_v11  ;;  %917 = vmatprep.subr.mxu1 %v166_v12  ;;  %v268_v11 = vld [vmem:[#allocation7 + $0x5e8] sm:$0xff] }
  0x9b   :  { %879 = vmatpush2.msra.mxu0 %v451_v13  ;;  %918 = vmatpush1.msra.mxu1 %v165_v14  ;;  %v364_v12 = vld [vmem:[#allocation7 + $0x8e8] sm:$0xff]  ;;  %v267_v13 = vld [vmem:[#allocation7 + $0x5e0] sm:$0xff] }
  0x9c   :  { %880 = vmatprep.subr.mxu0 %v446_v15  ;;  %919 = vmatprep.subr.mxu1 %v160_v16  ;;  %v363_v14 = vld [vmem:[#allocation7 + $0x8e0] sm:$0xff]  ;;  %v262_v15 = vld [vmem:[#allocation7 + $0x5b8] sm:$0xff] }
  0x9d   :  { %881 = vmatpush2.msra.mxu0 %v445_v0  ;;  %920 = vmatpush1.msra.mxu1 %v159_v17  ;;  %v358_v16 = vld [vmem:[#allocation7 + $0x8b8] sm:$0xff]  ;;  %v261_v0 = vld [vmem:[#allocation7 + $0x5b0] sm:$0xff] }
  0x9e   :  { %882 = vmatprep.subr.mxu0 %v440_v2  ;;  %921 = vmatprep.subr.mxu1 %v154_v18  ;;  %v357_v17 = vld [vmem:[#allocation7 + $0x8b0] sm:$0xff]  ;;  %v256_v2 = vld [vmem:[#allocation7 + $0x588] sm:$0xff] }
  0x9f   :  { %883 = vmatpush2.msra.mxu0 %v439_v19  ;;  %922 = vmatpush1.msra.mxu1 %v153_v20  ;;  %v352_v18 = vld [vmem:[#allocation7 + $0x888] sm:$0xff]  ;;  %v255_v19 = vld [vmem:[#allocation7 + $0x580] sm:$0xff] }
  0xa0   :  { %884 = vmatprep.subr.mxu0 %v434_v21  ;;  %923 = vmatprep.subr.mxu1 %v148_v22  ;;  %v351_v20 = vld [vmem:[#allocation7 + $0x880] sm:$0xff]  ;;  %v250_v21 = vld [vmem:[#allocation7 + $0x558] sm:$0xff] }
  0xa1   :  { %885 = vmatpush2.msra.mxu0 %v433_v23  ;;  %924 = vmatpush1.msra.mxu1 %v147_v24  ;;  %v346_v22 = vld [vmem:[#allocation7 + $0x858] sm:$0xff]  ;;  %v249_v23 = vld [vmem:[#allocation7 + $0x550] sm:$0xff] }
  0xa2   :  { %886 = vmatprep.subr.mxu0 %v428_v25  ;;  %925 = vmatprep.subr.mxu1 %v142_v26  ;;  %v345_v24 = vld [vmem:[#allocation7 + $0x850] sm:$0xff]  ;;  %v244_v25 = vld [vmem:[#allocation7 + $0x528] sm:$0xff] }
  0xa3   :  { %887 = vmatpush2.msra.mxu0 %v427_v27  ;;  %926 = vmatpush1.msra.mxu1 %v141_v28  ;;  %v340_v26 = vld [vmem:[#allocation7 + $0x828] sm:$0xff]  ;;  %v243_v27 = vld [vmem:[#allocation7 + $0x520] sm:$0xff] }
  0xa4   :  { %888 = vmatprep.subr.mxu0 %v422_v29  ;;  %927 = vmatprep.subr.mxu1 %v136_v30  ;;  %v339_v28 = vld [vmem:[#allocation7 + $0x820] sm:$0xff]  ;;  %v238_v29 = vld [vmem:[#allocation7 + $0x4f8] sm:$0xff] }
  0xa5   :  { %889 = vmatpush2.msra.mxu0 %v421_v31  ;;  %928 = vmatpush1.msra.mxu1 %v135_v32  ;;  %v334_v30 = vld [vmem:[#allocation7 + $0x7f8] sm:$0xff]  ;;  %v237_v31 = vld [vmem:[#allocation7 + $0x4f0] sm:$0xff] }
  0xa6   :  { %890 = vmatprep.subr.mxu0 %v416_v33  ;;  %929 = vmatprep.subr.mxu1 %v130_v34  ;;  %v333_v32 = vld [vmem:[#allocation7 + $0x7f0] sm:$0xff]  ;;  %v232_v33 = vld [vmem:[#allocation7 + $0x4c8] sm:$0xff] }
  0xa7   :  { %891 = vmatpush2.msra.mxu0 %v415_v35  ;;  %930 = vmatpush1.msra.mxu1 %v129_v36  ;;  %v328_v34 = vld [vmem:[#allocation7 + $0x7c8] sm:$0xff]  ;;  %v231_v35 = vld [vmem:[#allocation7 + $0x4c0] sm:$0xff] }
  0xa8   :  { %892 = vmatprep.subr.mxu0 %v410_v37  ;;  %931 = vmatprep.subr.mxu1 %v124_v38  ;;  %v327_v36 = vld [vmem:[#allocation7 + $0x7c0] sm:$0xff]  ;;  %v226_v37 = vld [vmem:[#allocation7 + $0x498] sm:$0xff] }
  0xa9   :  { %893 = vmatpush2.msra.mxu0 %v409_v39  ;;  %932 = vmatpush1.msra.mxu1 %v123_v40  ;;  %v322_v38 = vld [vmem:[#allocation7 + $0x798] sm:$0xff]  ;;  %v225_v39 = vld [vmem:[#allocation7 + $0x490] sm:$0xff] }
  0xaa   :  { %894 = vmatprep.subr.mxu0 %v404_v41  ;;  %933 = vmatprep.subr.mxu1 %v118_v42  ;;  %v321_v40 = vld [vmem:[#allocation7 + $0x790] sm:$0xff]  ;;  %v220_v41 = vld [vmem:[#allocation7 + $0x468] sm:$0xff] }
  0xab   :  { %895 = vmatpush2.msra.mxu0 %v403_v43  ;;  %934 = vmatpush1.msra.mxu1 %v117_v44  ;;  %v316_v42 = vld [vmem:[#allocation7 + $0x768] sm:$0xff]  ;;  %v219_v43 = vld [vmem:[#allocation7 + $0x460] sm:$0xff] }
  0xac   :  { %896 = vmatprep.subr.mxu0 %v398_v45  ;;  %935 = vmatprep.subr.mxu1 %v112_v46  ;;  %v315_v44 = vld [vmem:[#allocation7 + $0x760] sm:$0xff]  ;;  %v214_v45 = vld [vmem:[#allocation7 + $0x438] sm:$0xff] }
  0xad   :  { %897 = vmatpush2.msra.mxu0 %v397_v47  ;;  %936 = vmatpush1.msra.mxu1 %v111_v48  ;;  %v310_v46 = vld [vmem:[#allocation7 + $0x738] sm:$0xff]  ;;  %v213_v47 = vld [vmem:[#allocation7 + $0x430] sm:$0xff] }
  0xae   :  { %898 = vmatprep.subr.mxu0 %v392_v49  ;;  %937 = vmatprep.subr.mxu1 %v106_v50  ;;  %v309_v48 = vld [vmem:[#allocation7 + $0x730] sm:$0xff]  ;;  %v208_v49 = vld [vmem:[#allocation7 + $0x408] sm:$0xff] }
  0xaf   :  { %899 = vmatpush2.msra.mxu0 %v391_v51  ;;  %938 = vmatpush1.msra.mxu1 %v105_v52  ;;  %v304_v50 = vld [vmem:[#allocation7 + $0x708] sm:$0xff]  ;;  %v207_v51 = vld [vmem:[#allocation7 + $0x400] sm:$0xff] }
  0xb0   :  { %900 = vmatprep.subr.mxu0 %v386_v53  ;;  %939 = vmatprep.subr.mxu1 %v100_v54  ;;  %v303_v52 = vld [vmem:[#allocation7 + $0x700] sm:$0xff]  ;;  %v202_v53 = vld [vmem:[#allocation7 + $0x3d8] sm:$0xff] }
  0xb1   :  { %901 = vmatpush2.msra.mxu0 %v385_v55  ;;  %940 = vmatpush1.msra.mxu1 %v99_v56  ;;  %v298_v54 = vld [vmem:[#allocation7 + $0x6d8] sm:$0xff]  ;;  %v201_v55 = vld [vmem:[#allocation7 + $0x3d0] sm:$0xff] }
  0xb2   :  { %902 = vmatprep.subr.mxu0 %v380_v57  ;;  %941 = vmatprep.subr.mxu1 %v94_v58  ;;  %v297_v56 = vld [vmem:[#allocation7 + $0x6d0] sm:$0xff]  ;;  %v196_v57 = vld [vmem:[#allocation7 + $0x3a8] sm:$0xff] }
  0xb3   :  { %903 = vmatpush2.msra.mxu0 %v379_v59  ;;  %942 = vmatpush1.msra.mxu1 %v93_v60  ;;  %v292_v58 = vld [vmem:[#allocation7 + $0x6a8] sm:$0xff]  ;;  %v195_v59 = vld [vmem:[#allocation7 + $0x3a0] sm:$0xff] }
  0xb4   :  { %904 = vmatprep.subr.mxu0 %v374_v61  ;;  %943 = vmatprep.subr.mxu1 %v88_v62  ;;  %v291_v60 = vld [vmem:[#allocation7 + $0x6a0] sm:$0xff]  ;;  %v190_v61 = vld [vmem:[#allocation7 + $0x378] sm:$0xff] }
  0xb5   :  { %905 = vmatpush2.msra.mxu0 %v373_v63  ;;  %944 = vmatpush1.msra.mxu1 %v87_v1  ;;  %v286_v62 = vld [vmem:[#allocation7 + $0x678] sm:$0xff]  ;;  %v189_v63 = vld [vmem:[#allocation7 + $0x370] sm:$0xff] }
  0xb6   :  { %906 = vmatprep.subr.mxu0 %v368_v3  ;;  %945 = vmatprep.subr.mxu1 %v82_v5  ;;  %v285_v1 = vld [vmem:[#allocation7 + $0x670] sm:$0xff]  ;;  %v184_v3 = vld [vmem:[#allocation7 + $0x348] sm:$0xff] }
  0xb7   :  { %907 = vmatpush2.msra.mxu0 %v367_v7  ;;  %908 = vmatprep.mubr.f32.mxu0 %v1403_v8  ;;  %v280_v5 = vld [vmem:[#allocation7 + $0x648] sm:$0xff]  ;;  %v183_v7 = vld [vmem:[#allocation7 + $0x340] sm:$0xff] }
  0xb8   :  { %946 = vmatpush1.msra.mxu1 %v81_v9  ;;  %909 = vmatmul.mubr.f32.vlgmr.msra.gmra.mxu0 %v1405_v10  ;;  %v279_v9 = vld [vmem:[#allocation7 + $0x640] sm:$0xff] }
  0xb9   :  { %947 = vmatprep.subr.mxu1 %v268_v11  ;;  %986 = vmatprep.subr.mxu0 %v364_v12  ;;  %v178_v11 = vld [vmem:[#allocation7 + $0x318] sm:$0xff] }
  0xba   :  { %948 = vmatpush2.msra.mxu1 %v267_v13  ;;  %987 = vmatpush1.msra.mxu0 %v363_v14  ;;  %v274_v12 = vld [vmem:[#allocation7 + $0x618] sm:$0xff]  ;;  %v177_v13 = vld [vmem:[#allocation7 + $0x310] sm:$0xff] }
  0xbb   :  { %949 = vmatprep.subr.mxu1 %v262_v15  ;;  %988 = vmatprep.subr.mxu0 %v358_v16  ;;  %v273_v14 = vld [vmem:[#allocation7 + $0x610] sm:$0xff]  ;;  %v460_v15 = vld [vmem:[#allocation7 + $0xbe8] sm:$0xff]  ;;  %v174_v16 = vld [vmem:[#allocation7 + $0x2f8] sm:$0xff] }
  0xbc   :  { %950 = vmatpush2.msra.mxu1 %v261_v0  ;;  %989 = vmatpush1.msra.mxu0 %v357_v17  ;;  %v459_v0 = vld [vmem:[#allocation7 + $0xbe0] sm:$0xff]  ;;  %v173_v17 = vld [vmem:[#allocation7 + $0x2f0] sm:$0xff] }
  0xbd   :  { %951 = vmatprep.subr.mxu1 %v256_v2  ;;  %990 = vmatprep.subr.mxu0 %v352_v18  ;;  %v454_v2 = vld [vmem:[#allocation7 + $0xbb8] sm:$0xff]  ;;  %v168_v18 = vld [vmem:[#allocation7 + $0x2c8] sm:$0xff] }
  0xbe   :  { %952 = vmatpush2.msra.mxu1 %v255_v19  ;;  %991 = vmatpush1.msra.mxu0 %v351_v20  ;;  %v453_v19 = vld [vmem:[#allocation7 + $0xbb0] sm:$0xff]  ;;  %v167_v20 = vld [vmem:[#allocation7 + $0x2c0] sm:$0xff] }
  0xbf   :  { %953 = vmatprep.subr.mxu1 %v250_v21  ;;  %992 = vmatprep.subr.mxu0 %v346_v22  ;;  %v448_v21 = vld [vmem:[#allocation7 + $0xb88] sm:$0xff]  ;;  %v162_v22 = vld [vmem:[#allocation7 + $0x298] sm:$0xff] }
  0xc0   :  { %954 = vmatpush2.msra.mxu1 %v249_v23  ;;  %993 = vmatpush1.msra.mxu0 %v345_v24  ;;  %v447_v23 = vld [vmem:[#allocation7 + $0xb80] sm:$0xff]  ;;  %v161_v24 = vld [vmem:[#allocation7 + $0x290] sm:$0xff] }
  0xc1   :  { %955 = vmatprep.subr.mxu1 %v244_v25  ;;  %994 = vmatprep.subr.mxu0 %v340_v26  ;;  %v156_v25 = vld [vmem:[#allocation7 + $0x268] sm:$0xff]  ;;  %v155_v26 = vld [vmem:[#allocation7 + $0x260] sm:$0xff] }
  0xc2   :  { %956 = vmatpush2.msra.mxu1 %v243_v27  ;;  %995 = vmatpush1.msra.mxu0 %v339_v28  ;;  %v436_v27 = vld [vmem:[#allocation7 + $0xb28] sm:$0xff]  ;;  %v150_v28 = vld [vmem:[#allocation7 + $0x238] sm:$0xff] }
  0xc3   :  { %957 = vmatprep.subr.mxu1 %v238_v29  ;;  %996 = vmatprep.subr.mxu0 %v334_v30  ;;  %v435_v29 = vld [vmem:[#allocation7 + $0xb20] sm:$0xff]  ;;  %v149_v30 = vld [vmem:[#allocation7 + $0x230] sm:$0xff] }
  0xc4   :  { %958 = vmatpush2.msra.mxu1 %v237_v31  ;;  %997 = vmatpush1.msra.mxu0 %v333_v32  ;;  %v430_v31 = vld [vmem:[#allocation7 + $0xaf8] sm:$0xff]  ;;  %v144_v32 = vld [vmem:[#allocation7 + $0x208] sm:$0xff] }
  0xc5   :  { %959 = vmatprep.subr.mxu1 %v232_v33  ;;  %998 = vmatprep.subr.mxu0 %v328_v34  ;;  %v429_v33 = vld [vmem:[#allocation7 + $0xaf0] sm:$0xff]  ;;  %v143_v34 = vld [vmem:[#allocation7 + $0x200] sm:$0xff] }
  0xc6   :  { %960 = vmatpush2.msra.mxu1 %v231_v35  ;;  %999 = vmatpush1.msra.mxu0 %v327_v36  ;;  %v424_v35 = vld [vmem:[#allocation7 + $0xac8] sm:$0xff]  ;;  %v138_v36 = vld [vmem:[#allocation7 + $0x1d8] sm:$0xff] }
  0xc7   :  { %961 = vmatprep.subr.mxu1 %v226_v37  ;;  %1000 = vmatprep.subr.mxu0 %v322_v38  ;;  %v423_v37 = vld [vmem:[#allocation7 + $0xac0] sm:$0xff]  ;;  %v137_v38 = vld [vmem:[#allocation7 + $0x1d0] sm:$0xff] }
  0xc8   :  { %962 = vmatpush2.msra.mxu1 %v225_v39  ;;  %1001 = vmatpush1.msra.mxu0 %v321_v40  ;;  %v418_v39 = vld [vmem:[#allocation7 + $0xa98] sm:$0xff]  ;;  %v132_v40 = vld [vmem:[#allocation7 + $0x1a8] sm:$0xff] }
  0xc9   :  { %963 = vmatprep.subr.mxu1 %v220_v41  ;;  %1002 = vmatprep.subr.mxu0 %v316_v42  ;;  %v417_v41 = vld [vmem:[#allocation7 + $0xa90] sm:$0xff]  ;;  %v131_v42 = vld [vmem:[#allocation7 + $0x1a0] sm:$0xff] }
  0xca   :  { %964 = vmatpush2.msra.mxu1 %v219_v43  ;;  %1003 = vmatpush1.msra.mxu0 %v315_v44  ;;  %v412_v43 = vld [vmem:[#allocation7 + $0xa68] sm:$0xff]  ;;  %v126_v44 = vld [vmem:[#allocation7 + $0x178] sm:$0xff] }
  0xcb   :  { %965 = vmatprep.subr.mxu1 %v214_v45  ;;  %1004 = vmatprep.subr.mxu0 %v310_v46  ;;  %v411_v45 = vld [vmem:[#allocation7 + $0xa60] sm:$0xff]  ;;  %v125_v46 = vld [vmem:[#allocation7 + $0x170] sm:$0xff] }
  0xcc   :  { %966 = vmatpush2.msra.mxu1 %v213_v47  ;;  %1005 = vmatpush1.msra.mxu0 %v309_v48  ;;  %v406_v47 = vld [vmem:[#allocation7 + $0xa38] sm:$0xff]  ;;  %v120_v48 = vld [vmem:[#allocation7 + $0x148] sm:$0xff] }
  0xcd   :  { %967 = vmatprep.subr.mxu1 %v208_v49  ;;  %1006 = vmatprep.subr.mxu0 %v304_v50  ;;  %v405_v49 = vld [vmem:[#allocation7 + $0xa30] sm:$0xff]  ;;  %v119_v50 = vld [vmem:[#allocation7 + $0x140] sm:$0xff] }
  0xce   :  { %968 = vmatpush2.msra.mxu1 %v207_v51  ;;  %1007 = vmatpush1.msra.mxu0 %v303_v52  ;;  %v400_v51 = vld [vmem:[#allocation7 + $0xa08] sm:$0xff]  ;;  %v114_v52 = vld [vmem:[#allocation7 + $0x118] sm:$0xff] }
  0xcf   :  { %969 = vmatprep.subr.mxu1 %v202_v53  ;;  %1008 = vmatprep.subr.mxu0 %v298_v54  ;;  %v399_v53 = vld [vmem:[#allocation7 + $0xa00] sm:$0xff]  ;;  %v113_v54 = vld [vmem:[#allocation7 + $0x110] sm:$0xff] }
  0xd0   :  { %970 = vmatpush2.msra.mxu1 %v201_v55  ;;  %1009 = vmatpush1.msra.mxu0 %v297_v56  ;;  %v394_v55 = vld [vmem:[#allocation7 + $0x9d8] sm:$0xff]  ;;  %v108_v56 = vld [vmem:[#allocation7 + $0xe8] sm:$0xff] }
  0xd1   :  { %971 = vmatprep.subr.mxu1 %v196_v57  ;;  %1010 = vmatprep.subr.mxu0 %v292_v58  ;;  %v393_v57 = vld [vmem:[#allocation7 + $0x9d0] sm:$0xff]  ;;  %v107_v58 = vld [vmem:[#allocation7 + $0xe0] sm:$0xff] }
  0xd2   :  { %972 = vmatpush2.msra.mxu1 %v195_v59  ;;  %1011 = vmatpush1.msra.mxu0 %v291_v60  ;;  %v388_v59 = vld [vmem:[#allocation7 + $0x9a8] sm:$0xff]  ;;  %v102_v60 = vld [vmem:[#allocation7 + $0xb8] sm:$0xff] }
  0xd3   :  { %973 = vmatprep.subr.mxu1 %v190_v61  ;;  %1012 = vmatprep.subr.mxu0 %v286_v62  ;;  %v387_v61 = vld [vmem:[#allocation7 + $0x9a0] sm:$0xff]  ;;  %v101_v62 = vld [vmem:[#allocation7 + $0xb0] sm:$0xff] }
  0xd4   :  { %974 = vmatpush2.msra.mxu1 %v189_v63  ;;  %1013 = vmatpush1.msra.mxu0 %v285_v1  ;;  %v382_v63 = vld [vmem:[#allocation7 + $0x978] sm:$0xff]  ;;  %v96_v1 = vld [vmem:[#allocation7 + $0x88] sm:$0xff] }
  0xd5   :  { %975 = vmatprep.subr.mxu1 %v184_v3  ;;  %1014 = vmatprep.subr.mxu0 %v280_v5  ;;  %v381_v3 = vld [vmem:[#allocation7 + $0x970] sm:$0xff]  ;;  %v95_v5 = vld [vmem:[#allocation7 + $0x80] sm:$0xff] }
  0xd6   :  { %976 = vmatpush2.msra.mxu1 %v183_v7  ;;  %1015 = vmatpush1.msra.mxu0 %v279_v9  ;;  %v376_v7 = vld [vmem:[#allocation7 + $0x948] sm:$0xff]  ;;  %v90_v9 = vld [vmem:[#allocation7 + $0x58] sm:$0xff] }
  0xd7   :  { %977 = vmatprep.subr.mxu1 %v178_v11  ;;  %1016 = vmatprep.subr.mxu0 %v274_v12  ;;  %v375_v11 = vld [vmem:[#allocation7 + $0x940] sm:$0xff]  ;;  %v89_v12 = vld [vmem:[#allocation7 + $0x50] sm:$0xff] }
  0xd8   :  { %978 = vmatpush2.msra.mxu1 %v177_v13  ;;  %979 = vmatprep.mubr.f32.mxu1 %v1397_v4  ;;  %v442_v4 = vld [vmem:[#allocation7 + $0xb58] sm:$0xff] }
  0xd9   :  { %1017 = vmatpush1.msra.mxu0 %v273_v14  ;;  %980 = vmatmul.mubr.f32.vlgmr.msra.gmra.mxu1 %v1399_v6  ;;  %v441_v6 = vld [vmem:[#allocation7 + $0xb50] sm:$0xff]  ;;  %v370_v13 = vld [vmem:[#allocation7 + $0x918] sm:$0xff]  ;;  %v84_v14 = vld [vmem:[#allocation7 + $0x28] sm:$0xff] }
  0xda   :  { %1018 = vmatprep.subr.mxu0 %v460_v15  ;;  %1057 = vmatprep.subr.mxu1 %v174_v16  ;;  %v369_v15 = vld [vmem:[#allocation7 + $0x910] sm:$0xff]  ;;  %v83_v16 = vld [vmem:[#allocation7 + $0x20] sm:$0xff] }
  0xdb   :  { %1019 = vmatpush2.msra.mxu0 %v459_v0  ;;  %1058 = vmatpush1.msra.mxu1 %v173_v17  ;;  %v270_v0 = vld [vmem:[#allocation7 + $0x5f8] sm:$0xff] }
  0xdc   :  { %1020 = vmatprep.subr.mxu0 %v454_v2  ;;  %1059 = vmatprep.subr.mxu1 %v168_v18  ;;  %v366_v17 = vld [vmem:[#allocation7 + $0x8f8] sm:$0xff]  ;;  %v269_v2 = vld [vmem:[#allocation7 + $0x5f0] sm:$0xff] }
  0xdd   :  { %1021 = vmatpush2.msra.mxu0 %v453_v19  ;;  %1060 = vmatpush1.msra.mxu1 %v167_v20  ;;  %v365_v18 = vld [vmem:[#allocation7 + $0x8f0] sm:$0xff]  ;;  %v264_v19 = vld [vmem:[#allocation7 + $0x5c8] sm:$0xff] }
  0xde   :  { %1022 = vmatprep.subr.mxu0 %v448_v21  ;;  %1061 = vmatprep.subr.mxu1 %v162_v22  ;;  %v360_v20 = vld [vmem:[#allocation7 + $0x8c8] sm:$0xff]  ;;  %v263_v21 = vld [vmem:[#allocation7 + $0x5c0] sm:$0xff] }
  0xdf   :  { %1023 = vmatpush2.msra.mxu0 %v447_v23  ;;  %1062 = vmatpush1.msra.mxu1 %v161_v24  ;;  %v359_v22 = vld [vmem:[#allocation7 + $0x8c0] sm:$0xff]  ;;  %v258_v23 = vld [vmem:[#allocation7 + $0x598] sm:$0xff] }
  0xe0   :  { %1024 = vmatprep.subr.mxu0 %v442_v4  ;;  %1063 = vmatprep.subr.mxu1 %v156_v25  ;;  %v354_v24 = vld [vmem:[#allocation7 + $0x898] sm:$0xff]  ;;  %v257_v4 = vld [vmem:[#allocation7 + $0x590] sm:$0xff] }
  0xe1   :  { %1025 = vmatpush2.msra.mxu0 %v441_v6  ;;  %1064 = vmatpush1.msra.mxu1 %v155_v26  ;;  %v353_v25 = vld [vmem:[#allocation7 + $0x890] sm:$0xff]  ;;  %v252_v6 = vld [vmem:[#allocation7 + $0x568] sm:$0xff] }
  0xe2   :  { %1026 = vmatprep.subr.mxu0 %v436_v27  ;;  %1065 = vmatprep.subr.mxu1 %v150_v28  ;;  %v348_v26 = vld [vmem:[#allocation7 + $0x868] sm:$0xff]  ;;  %v251_v27 = vld [vmem:[#allocation7 + $0x560] sm:$0xff] }
  0xe3   :  { %1027 = vmatpush2.msra.mxu0 %v435_v29  ;;  %1066 = vmatpush1.msra.mxu1 %v149_v30  ;;  %v347_v28 = vld [vmem:[#allocation7 + $0x860] sm:$0xff]  ;;  %v246_v29 = vld [vmem:[#allocation7 + $0x538] sm:$0xff] }
  0xe4   :  { %1028 = vmatprep.subr.mxu0 %v430_v31  ;;  %1067 = vmatprep.subr.mxu1 %v144_v32  ;;  %v342_v30 = vld [vmem:[#allocation7 + $0x838] sm:$0xff]  ;;  %v245_v31 = vld [vmem:[#allocation7 + $0x530] sm:$0xff] }
  0xe5   :  { %1029 = vmatpush2.msra.mxu0 %v429_v33  ;;  %1068 = vmatpush1.msra.mxu1 %v143_v34  ;;  %v341_v32 = vld [vmem:[#allocation7 + $0x830] sm:$0xff]  ;;  %v240_v33 = vld [vmem:[#allocation7 + $0x508] sm:$0xff] }
  0xe6   :  { %1030 = vmatprep.subr.mxu0 %v424_v35  ;;  %1069 = vmatprep.subr.mxu1 %v138_v36  ;;  %v336_v34 = vld [vmem:[#allocation7 + $0x808] sm:$0xff]  ;;  %v239_v35 = vld [vmem:[#allocation7 + $0x500] sm:$0xff] }
  0xe7   :  { %1031 = vmatpush2.msra.mxu0 %v423_v37  ;;  %1070 = vmatpush1.msra.mxu1 %v137_v38  ;;  %v335_v36 = vld [vmem:[#allocation7 + $0x800] sm:$0xff]  ;;  %v234_v37 = vld [vmem:[#allocation7 + $0x4d8] sm:$0xff] }
  0xe8   :  { %1032 = vmatprep.subr.mxu0 %v418_v39  ;;  %1071 = vmatprep.subr.mxu1 %v132_v40  ;;  %v330_v38 = vld [vmem:[#allocation7 + $0x7d8] sm:$0xff]  ;;  %v233_v39 = vld [vmem:[#allocation7 + $0x4d0] sm:$0xff] }
  0xe9   :  { %1033 = vmatpush2.msra.mxu0 %v417_v41  ;;  %1072 = vmatpush1.msra.mxu1 %v131_v42  ;;  %v329_v40 = vld [vmem:[#allocation7 + $0x7d0] sm:$0xff]  ;;  %v228_v41 = vld [vmem:[#allocation7 + $0x4a8] sm:$0xff] }
  0xea   :  { %1034 = vmatprep.subr.mxu0 %v412_v43  ;;  %1073 = vmatprep.subr.mxu1 %v126_v44  ;;  %v324_v42 = vld [vmem:[#allocation7 + $0x7a8] sm:$0xff]  ;;  %v227_v43 = vld [vmem:[#allocation7 + $0x4a0] sm:$0xff] }
  0xeb   :  { %1035 = vmatpush2.msra.mxu0 %v411_v45  ;;  %1074 = vmatpush1.msra.mxu1 %v125_v46  ;;  %v323_v44 = vld [vmem:[#allocation7 + $0x7a0] sm:$0xff]  ;;  %v222_v45 = vld [vmem:[#allocation7 + $0x478] sm:$0xff] }
  0xec   :  { %1036 = vmatprep.subr.mxu0 %v406_v47  ;;  %1075 = vmatprep.subr.mxu1 %v120_v48  ;;  %v318_v46 = vld [vmem:[#allocation7 + $0x778] sm:$0xff]  ;;  %v221_v47 = vld [vmem:[#allocation7 + $0x470] sm:$0xff] }
  0xed   :  { %1037 = vmatpush2.msra.mxu0 %v405_v49  ;;  %1076 = vmatpush1.msra.mxu1 %v119_v50  ;;  %v317_v48 = vld [vmem:[#allocation7 + $0x770] sm:$0xff]  ;;  %v216_v49 = vld [vmem:[#allocation7 + $0x448] sm:$0xff] }
  0xee   :  { %1038 = vmatprep.subr.mxu0 %v400_v51  ;;  %1077 = vmatprep.subr.mxu1 %v114_v52  ;;  %v312_v50 = vld [vmem:[#allocation7 + $0x748] sm:$0xff]  ;;  %v215_v51 = vld [vmem:[#allocation7 + $0x440] sm:$0xff] }
  0xef   :  { %1039 = vmatpush2.msra.mxu0 %v399_v53  ;;  %1078 = vmatpush1.msra.mxu1 %v113_v54  ;;  %v311_v52 = vld [vmem:[#allocation7 + $0x740] sm:$0xff]  ;;  %v210_v53 = vld [vmem:[#allocation7 + $0x418] sm:$0xff] }
  0xf0   :  { %1040 = vmatprep.subr.mxu0 %v394_v55  ;;  %1079 = vmatprep.subr.mxu1 %v108_v56  ;;  %v306_v54 = vld [vmem:[#allocation7 + $0x718] sm:$0xff]  ;;  %v209_v55 = vld [vmem:[#allocation7 + $0x410] sm:$0xff] }
  0xf1   :  { %1041 = vmatpush2.msra.mxu0 %v393_v57  ;;  %1080 = vmatpush1.msra.mxu1 %v107_v58  ;;  %v305_v56 = vld [vmem:[#allocation7 + $0x710] sm:$0xff]  ;;  %v204_v57 = vld [vmem:[#allocation7 + $0x3e8] sm:$0xff] }
  0xf2   :  { %1042 = vmatprep.subr.mxu0 %v388_v59  ;;  %1081 = vmatprep.subr.mxu1 %v102_v60  ;;  %v300_v58 = vld [vmem:[#allocation7 + $0x6e8] sm:$0xff]  ;;  %v203_v59 = vld [vmem:[#allocation7 + $0x3e0] sm:$0xff] }
  0xf3   :  { %1043 = vmatpush2.msra.mxu0 %v387_v61  ;;  %1082 = vmatpush1.msra.mxu1 %v101_v62  ;;  %v299_v60 = vld [vmem:[#allocation7 + $0x6e0] sm:$0xff]  ;;  %v198_v61 = vld [vmem:[#allocation7 + $0x3b8] sm:$0xff] }
  0xf4   :  { %1044 = vmatprep.subr.mxu0 %v382_v63  ;;  %1083 = vmatprep.subr.mxu1 %v96_v1  ;;  %v294_v62 = vld [vmem:[#allocation7 + $0x6b8] sm:$0xff]  ;;  %v197_v63 = vld [vmem:[#allocation7 + $0x3b0] sm:$0xff] }
  0xf5   :  { %1045 = vmatpush2.msra.mxu0 %v381_v3  ;;  %1084 = vmatpush1.msra.mxu1 %v95_v5  ;;  %v293_v1 = vld [vmem:[#allocation7 + $0x6b0] sm:$0xff]  ;;  %v192_v3 = vld [vmem:[#allocation7 + $0x388] sm:$0xff] }
  0xf6   :  { %1046 = vmatprep.subr.mxu0 %v376_v7  ;;  %1085 = vmatprep.subr.mxu1 %v90_v9  ;;  %v288_v5 = vld [vmem:[#allocation7 + $0x688] sm:$0xff]  ;;  %v191_v7 = vld [vmem:[#allocation7 + $0x380] sm:$0xff] }
  0xf7   :  { %1047 = vmatpush2.msra.mxu0 %v375_v11  ;;  %1086 = vmatpush1.msra.mxu1 %v89_v12  ;;  %v287_v9 = vld [vmem:[#allocation7 + $0x680] sm:$0xff]  ;;  %v186_v11 = vld [vmem:[#allocation7 + $0x358] sm:$0xff] }
  0xf8   :  { %1048 = vmatprep.subr.mxu0 %v370_v13  ;;  %1087 = vmatprep.subr.mxu1 %v84_v14  ;;  %v282_v12 = vld [vmem:[#allocation7 + $0x658] sm:$0xff]  ;;  %v185_v13 = vld [vmem:[#allocation7 + $0x350] sm:$0xff] }
  0xf9   :  { %1049 = vmatpush2.msra.mxu0 %v369_v15  ;;  %1050 = vmatprep.mubr.f32.mxu0 %v1403_v8  ;;  %v281_v14 = vld [vmem:[#allocation7 + $0x650] sm:$0xff]  ;;  %v180_v15 = vld [vmem:[#allocation7 + $0x328] sm:$0xff] }
  0xfa   :  { %1088 = vmatpush1.msra.mxu1 %v83_v16  ;;  %1051 = vmatmul.mubr.f32.vlgmr.msra.gmra.mxu0 %v1405_v10  ;;  %v276_v16 = vld [vmem:[#allocation7 + $0x628] sm:$0xff] }
  0xfb   :  { %1089 = vmatprep.subr.mxu1 %v270_v0  ;;  %1128 = vmatprep.subr.mxu0 %v366_v17  ;;  %v179_v0 = vld [vmem:[#allocation7 + $0x320] sm:$0xff] }
  0xfc   :  { %1090 = vmatpush2.msra.mxu1 %v269_v2  ;;  %1129 = vmatpush1.msra.mxu0 %v365_v18  ;;  %v275_v17 = vld [vmem:[#allocation7 + $0x620] sm:$0xff]  ;;  %v462_v2 = vld [vmem:[#allocation7 + $0xbf8] sm:$0xff] }
  0xfd   :  { %1091 = vmatprep.subr.mxu1 %v264_v19  ;;  %1130 = vmatprep.subr.mxu0 %v360_v20  ;;  %v1231_v18 = vld [vmem:[#allocation2 + $0x8] sm:$0xff]  ;;  %v461_v19 = vld [vmem:[#allocation7 + $0xbf0] sm:$0xff]  ;;  %v1232_v20 = vld [vmem:[#allocation2] sm:$0xff] }
  0xfe   :  { %1092 = vmatpush2.msra.mxu1 %v263_v21  ;;  %1131 = vmatpush1.msra.mxu0 %v359_v22  ;;  %v456_v21 = vld [vmem:[#allocation7 + $0xbc8] sm:$0xff]  ;;  %v455_v22 = vld [vmem:[#allocation7 + $0xbc0] sm:$0xff] }
  0xff   :  { %1093 = vmatprep.subr.mxu1 %v258_v23  ;;  %1132 = vmatprep.subr.mxu0 %v354_v24  ;;  %v450_v23 = vld [vmem:[#allocation7 + $0xb98] sm:$0xff]  ;;  %v449_v24 = vld [vmem:[#allocation7 + $0xb90] sm:$0xff] }
 0x100   :  { %1094 = vmatpush2.msra.mxu1 %v257_v4  ;;  %1133 = vmatpush1.msra.mxu0 %v353_v25  ;;  %v444_v4 = vld [vmem:[#allocation7 + $0xb68] sm:$0xff]  ;;  %v443_v25 = vld [vmem:[#allocation7 + $0xb60] sm:$0xff] }
 0x101   :  { %1095 = vmatprep.subr.mxu1 %v252_v6  ;;  %1134 = vmatprep.subr.mxu0 %v348_v26  ;;  %v438_v6 = vld [vmem:[#allocation7 + $0xb38] sm:$0xff]  ;;  %v437_v26 = vld [vmem:[#allocation7 + $0xb30] sm:$0xff] }
 0x102   :  { %1096 = vmatpush2.msra.mxu1 %v251_v27  ;;  %1135 = vmatpush1.msra.mxu0 %v347_v28  ;;  %v432_v27 = vld [vmem:[#allocation7 + $0xb08] sm:$0xff]  ;;  %v431_v28 = vld [vmem:[#allocation7 + $0xb00] sm:$0xff] }
 0x103   :  { %1097 = vmatprep.subr.mxu1 %v246_v29  ;;  %1136 = vmatprep.subr.mxu0 %v342_v30  ;;  %v426_v29 = vld [vmem:[#allocation7 + $0xad8] sm:$0xff]  ;;  %v420_v30 = vld [vmem:[#allocation7 + $0xaa8] sm:$0xff] }
 0x104   :  { %1098 = vmatpush2.msra.mxu1 %v245_v31  ;;  %1137 = vmatpush1.msra.mxu0 %v341_v32  ;;  %v419_v31 = vld [vmem:[#allocation7 + $0xaa0] sm:$0xff]  ;;  %v414_v32 = vld [vmem:[#allocation7 + $0xa78] sm:$0xff] }
 0x105   :  { %1099 = vmatprep.subr.mxu1 %v240_v33  ;;  %1138 = vmatprep.subr.mxu0 %v336_v34  ;;  %v413_v33 = vld [vmem:[#allocation7 + $0xa70] sm:$0xff]  ;;  %v408_v34 = vld [vmem:[#allocation7 + $0xa48] sm:$0xff] }
 0x106   :  { %1100 = vmatpush2.msra.mxu1 %v239_v35  ;;  %1139 = vmatpush1.msra.mxu0 %v335_v36  ;;  %v407_v35 = vld [vmem:[#allocation7 + $0xa40] sm:$0xff]  ;;  %v402_v36 = vld [vmem:[#allocation7 + $0xa18] sm:$0xff] }
 0x107   :  { %1101 = vmatprep.subr.mxu1 %v234_v37  ;;  %1140 = vmatprep.subr.mxu0 %v330_v38  ;;  %v401_v37 = vld [vmem:[#allocation7 + $0xa10] sm:$0xff]  ;;  %v396_v38 = vld [vmem:[#allocation7 + $0x9e8] sm:$0xff] }
 0x108   :  { %1102 = vmatpush2.msra.mxu1 %v233_v39  ;;  %1141 = vmatpush1.msra.mxu0 %v329_v40  ;;  %v395_v39 = vld [vmem:[#allocation7 + $0x9e0] sm:$0xff]  ;;  %v390_v40 = vld [vmem:[#allocation7 + $0x9b8] sm:$0xff] }
 0x109   :  { %1103 = vmatprep.subr.mxu1 %v228_v41  ;;  %1142 = vmatprep.subr.mxu0 %v324_v42  ;;  %v389_v41 = vld [vmem:[#allocation7 + $0x9b0] sm:$0xff]  ;;  %v384_v42 = vld [vmem:[#allocation7 + $0x988] sm:$0xff] }
 0x10a   :  { %1104 = vmatpush2.msra.mxu1 %v227_v43  ;;  %1143 = vmatpush1.msra.mxu0 %v323_v44  ;;  %v383_v43 = vld [vmem:[#allocation7 + $0x980] sm:$0xff]  ;;  %v378_v44 = vld [vmem:[#allocation7 + $0x958] sm:$0xff] }
 0x10b   :  { %1105 = vmatprep.subr.mxu1 %v222_v45  ;;  %1144 = vmatprep.subr.mxu0 %v318_v46  ;;  %v377_v45 = vld [vmem:[#allocation7 + $0x950] sm:$0xff]  ;;  %v372_v46 = vld [vmem:[#allocation7 + $0x928] sm:$0xff] }
 0x10c   :  { %1106 = vmatpush2.msra.mxu1 %v221_v47  ;;  %1145 = vmatpush1.msra.mxu0 %v317_v48  ;;  %v371_v47 = vld [vmem:[#allocation7 + $0x920] sm:$0xff] }
 0x10d   :  { %1107 = vmatprep.subr.mxu1 %v216_v49  ;;  %1146 = vmatprep.subr.mxu0 %v312_v50 }
 0x10e   :  { %1108 = vmatpush2.msra.mxu1 %v215_v51  ;;  %1147 = vmatpush1.msra.mxu0 %v311_v52 }
 0x10f   :  { %1109 = vmatprep.subr.mxu1 %v210_v53  ;;  %1148 = vmatprep.subr.mxu0 %v306_v54 }
 0x110   :  { %1110 = vmatpush2.msra.mxu1 %v209_v55  ;;  %1149 = vmatpush1.msra.mxu0 %v305_v56 }
 0x111   :  { %1111 = vmatprep.subr.mxu1 %v204_v57  ;;  %1150 = vmatprep.subr.mxu0 %v300_v58 }
 0x112   :  { %1112 = vmatpush2.msra.mxu1 %v203_v59  ;;  %1151 = vmatpush1.msra.mxu0 %v299_v60 }
 0x113   :  { %1113 = vmatprep.subr.mxu1 %v198_v61  ;;  %1152 = vmatprep.subr.mxu0 %v294_v62 }
 0x114   :  { %1114 = vmatpush2.msra.mxu1 %v197_v63  ;;  %1153 = vmatpush1.msra.mxu0 %v293_v1 }
 0x115   :  { %1115 = vmatprep.subr.mxu1 %v192_v3  ;;  %1154 = vmatprep.subr.mxu0 %v288_v5  ;;  %v626_v48 = vpop.f32.mrf.mxu0 }
 0x116   :  { %1116 = vmatpush2.msra.mxu1 %v191_v7  ;;  %1155 = vmatpush1.msra.mxu0 %v287_v9  ;;  %v697_v49 = vpop.f32.mrf.mxu1 }
 0x117   :  { %1117 = vmatprep.subr.mxu1 %v186_v11  ;;  %1156 = vmatprep.subr.mxu0 %v282_v12  ;;  %v628_v50 = vpop.f32.mrf.mxu0 }
 0x118   :  { %1118 = vmatpush2.msra.mxu1 %v185_v13  ;;  %1157 = vmatpush1.msra.mxu0 %v281_v14  ;;  %v699_v51 = vpop.f32.mrf.mxu1 }
 0x119   :  { %1119 = vmatprep.subr.mxu1 %v180_v15  ;;  %1158 = vmatprep.subr.mxu0 %v276_v16 }
 0x11a   :  { %1120 = vmatpush2.msra.mxu1 %v179_v0  ;;  %1121 = vmatprep.mubr.f32.mxu1 %v1231_v18 }
 0x11b   :  { %1159 = vmatpush1.msra.mxu0 %v275_v17  ;;  %1122 = vmatmul.mubr.f32.vlgmr.msra.gmra.mxu1 %v1232_v20 }
 0x11c   :  { %1160 = vmatprep.subr.mxu0 %v462_v2  ;;  %1192 = vmatprep.mubr.f32.mxu0 %v1403_v8  ;;  %v425_v8 = vld [vmem:[#allocation7 + $0xad0] sm:$0xff] }
 0x11d   :  { %1161 = vmatpush2.msra.mxu0 %v461_v19 }
 0x11e   :  { %1162 = vmatprep.subr.mxu0 %v456_v21 }
 0x11f   :  { %1163 = vmatpush2.msra.mxu0 %v455_v22 }
 0x120   :  { %1164 = vmatprep.subr.mxu0 %v450_v23 }
 0x121   :  { %1165 = vmatpush2.msra.mxu0 %v449_v24 }
 0x122   :  { %1166 = vmatprep.subr.mxu0 %v444_v4 }
 0x123   :  { %1167 = vmatpush2.msra.mxu0 %v443_v25 }
 0x124   :  { %1168 = vmatprep.subr.mxu0 %v438_v6 }
 0x125   :  { %1169 = vmatpush2.msra.mxu0 %v437_v26 }
 0x126   :  { %1170 = vmatprep.subr.mxu0 %v432_v27 }
 0x127   :  { %1171 = vmatpush2.msra.mxu0 %v431_v28 }
 0x128   :  { %1172 = vmatprep.subr.mxu0 %v426_v29 }
 0x129   :  { %1173 = vmatpush2.msra.mxu0 %v425_v8 }
 0x12a   :  { %1174 = vmatprep.subr.mxu0 %v420_v30 }
 0x12b   :  { %1175 = vmatpush2.msra.mxu0 %v419_v31 }
 0x12c   :  { %1176 = vmatprep.subr.mxu0 %v414_v32 }
 0x12d   :  { %1177 = vmatpush2.msra.mxu0 %v413_v33 }
 0x12e   :  { %1178 = vmatprep.subr.mxu0 %v408_v34 }
 0x12f   :  { %1179 = vmatpush2.msra.mxu0 %v407_v35 }
 0x130   :  { %1180 = vmatprep.subr.mxu0 %v402_v36 }
 0x131   :  { %1181 = vmatpush2.msra.mxu0 %v401_v37 }
 0x132   :  { %1182 = vmatprep.subr.mxu0 %v396_v38 }
 0x133   :  { %1183 = vmatpush2.msra.mxu0 %v395_v39 }
 0x134   :  { %1184 = vmatprep.subr.mxu0 %v390_v40 }
 0x135   :  { %1185 = vmatpush2.msra.mxu0 %v389_v41 }
 0x136   :  { %1186 = vmatprep.subr.mxu0 %v384_v42  ;;  %v768_v52 = vpop.f32.mrf.mxu0 }
 0x137   :  { %1187 = vmatpush2.msra.mxu0 %v383_v43 }
 0x138   :  { %1188 = vmatprep.subr.mxu0 %v378_v44  ;;  %v770_v54 = vpop.f32.mrf.mxu0 }
 0x139   :  { %1189 = vmatpush2.msra.mxu0 %v377_v45 }
 0x13a   :  { %1190 = vmatprep.subr.mxu0 %v372_v46 }
 0x13b   :  { %1191 = vmatpush2.msra.mxu0 %v371_v47 }
 0x13c   :  { %1193 = vmatmul.mubr.f32.vlgmr.msra.gmra.mxu0 %v1405_v10 }
 0x157   :  { %v839_v53 = vpop.f32.mrf.mxu1 }
 0x158   :  { %v840_v56 = vadd.f32 %v839_v53, %v626_v48 }
 0x159   :  { %v841_v55 = vpop.f32.mrf.mxu1 }
 0x15a   :  { %v842_v58 = vadd.f32 %v841_v55, %v628_v50 }
 0x178   :  { %v910_v57 = vpop.f32.mrf.mxu0 }
 0x179   :  { %v911_v59 = vadd.f32 %v910_v57, %v840_v56 }
 0x17a   :  { %v912_v60 = vpop.f32.mrf.mxu0 }
 0x17b   :  { %1199 = vst [vmem:[#allocation10] sm:$0xff] %v911_v59  ;;  %v913_v61 = vadd.f32 %v912_v60, %v842_v58 }
 0x17d   :  { %1200 = vst [vmem:[#allocation10 + $0x8] sm:$0xff] %v913_v61 }
 0x199   :  { %v981_v62 = vpop.f32.mrf.mxu1 }
 0x19a   :  { %v982_v1 = vadd.f32 %v981_v62, %v697_v49 }
 0x19b   :  { %v983_v63 = vpop.f32.mrf.mxu1 }
 0x19c   :  { %v984_v3 = vadd.f32 %v983_v63, %v699_v51 }
 0x1ba   :  { %v1052_v10 = vpop.f32.mrf.mxu0 }
 0x1bb   :  { %v1053_v5 = vadd.f32 %v1052_v10, %v982_v1 }
 0x1bc   :  { %v1054_v7 = vpop.f32.mrf.mxu0 }
 0x1bd   :  { %1201 = vst [vmem:[#allocation10 + $0x10] sm:$0xff] %v1053_v5  ;;  %v1055_v9 = vadd.f32 %v1054_v7, %v984_v3 }
 0x1bf   :  { %1202 = vst [vmem:[#allocation10 + $0x18] sm:$0xff] %v1055_v9 }
 0x1db   :  { %v1123_v11 = vpop.f32.mrf.mxu1 }
 0x1dc   :  { %v1124_v13 = vadd.f32 %v1123_v11, %v768_v52 }
 0x1dd   :  { %v1125_v12 = vpop.f32.mrf.mxu1 }
 0x1de   :  { %v1126_v15 = vadd.f32 %v1125_v12, %v770_v54 }
 0x1fc   :  { %v1194_v14 = vpop.f32.mrf.mxu0 }
 0x1fd   :  { %v1195_v16 = vadd.f32 %v1194_v14, %v1124_v13 }
 0x1fe   :  { %v1196_v0 = vpop.f32.mrf.mxu0 }
 0x1ff   :  { %1203 = vst [vmem:[#allocation10 + $0x20] sm:$0xff] %v1195_v16  ;;  %v1197_v17 = vadd.f32 %v1196_v0, %v1126_v15 }
 0x201   :  { %1204 = vst [vmem:[#allocation10 + $0x28] sm:$0xff] %v1197_v17 }
 0x202   :  { %1327 = shalt.err (!%p1324_p10)
}
 0x203   :  { %1214 = dma.vmem_to_hbm [thread:$0]  %s1212_s3, 768, %s1422_s4, [#allocation4]  }
 0x204   :  { %1342 = dma.done.wait [#allocation4], 768  }
 0x205   :  { %1343 = vsyncadd [#allocation4], 4294966528 }
 0x206   :  { %1218 = vsyncpa [#allocation3], 1 }
 0x207   :  { %1219 = vsyncpa [#allocation6], 1 }
 0x208   :  { %1220 = vsyncpa [#allocation9], 1 }
 0x209   :  { %1221 = vsyncpa [#allocation4], 1 }

</bundles_post_ra>
